<compile_context>
chip_gen: v5e
topology: v5e:2x2
jax: 0.10.0
libtpu: 0.0.40
codegen_flags: <defaults>
</compile_context>

<pallas_src>
from functools import partial

import numpy as np

import jax
import jax.numpy as jnp
from jax.experimental import pallas as pl
from jax.experimental.pallas import tpu as pltpu

NEG_SLOPE = 0.01   # F.leaky_relu default
BN_EPS = 1e-5      # nn.BatchNorm2d default


def _leaky_relu(x):
    return jnp.where(x > 0, x, NEG_SLOPE * x)


def _vmem():
    return pl.BlockSpec(memory_space=pltpu.MemorySpace.VMEM)


# ----------------------------- fused Pallas kernel -----------------------------
#
# Activation storage conventions (all f32, all resident in VMEM):
#   conv1 input  x_ref : (30*N, 30)   rows = [even padded-h | odd padded-h] x N,
#                                     lanes = [even padded-w | odd padded-w] (C=1)
#   conv2 input  s2    : (16*N, 128)  rows = [even padded-h (8) | odd (8)] x N,
#                                     lanes = 16 blocks of 8 ch (2 pad blocks last)
#   conv3 input  s3    : (7*N, 112)   rows = [even h (4) | odd h (3)] x N,
#                                     lanes = 7 blocks of 16 ch (even w first)
# Each conv is  sum_{kh=0..2}  LHS_kh @ rhs[kh] + bias, where LHS_kh is a contiguous
# row slice of the stored input and rhs[kh] is a block-banded matrix built in glue.

def fused_encoder_kernel(x_ref, rhs1_ref, b1_ref,
                         rhs2_ref, b2_ref, g2_ref, be2_ref,
                         rhs3_ref, b3_ref,
                         w1s_ref, bl1_ref, w23_ref, b23_ref, eps_ref,
                         z_ref, kl_ref, s2_ref, s3_ref, *, N, L):
    f32 = jnp.float32

    def conv3tap(src_ref, starts, n_rows, rhs_ref, bias_ref):
        acc = None
        for kh in range(3):
            lhs = src_ref[starts[kh]:starts[kh] + n_rows, :]
            t = jnp.dot(lhs, rhs_ref[kh], preferred_element_type=f32)
            acc = t if acc is None else acc + t
        return acc + bias_ref[...]

    # ---------------- conv1: 1->8, k3 s2 p1, leaky_relu ----------------
    # output rows (ho, n), ho = 0..13; output lanes = 14 blocks of 8 channels,
    # already ordered the way the conv2 input scratch wants them.
    y1 = _leaky_relu(conv3tap(x_ref, (0, 15 * N, N), 14 * N, rhs1_ref, b1_ref))

    # scatter into the (zero-padded) conv2-input scratch, even/odd padded-h split
    s2_ref[...] = jnp.zeros_like(s2_ref)
    for ho in range(14):
        if ho % 2 == 1:                      # padded h = ho+1 is even
            r0 = ((ho + 1) // 2) * N
        else:                                # padded h = ho+1 is odd
            r0 = (8 + ho // 2) * N
        s2_ref[r0:r0 + N, 0:112] = y1[ho * N:(ho + 1) * N, :]

    # ---------------- conv2: 8->16, k3 s2 p1, BatchNorm2d + leaky_relu ----------------
    y2 = conv3tap(s2_ref, (0, 8 * N, N), 7 * N, rhs2_ref, b2_ref)       # (7N, 112)

    # training-mode batch statistics over (N, H, W) per channel; lanes are 7 groups
    # of 16 channels, so reduce the 7 lane groups + all rows.
    cnt = float(N * 7 * 7)
    gsum = y2[:, 0:16]
    for g in range(1, 7):
        gsum = gsum + y2[:, g * 16:(g + 1) * 16]
    mean_c = jnp.sum(gsum, axis=0, keepdims=True) / cnt                  # (1, 16)
    mean_f = jnp.concatenate([mean_c] * 7, axis=1)                       # (1, 112)
    d = y2 - mean_f
    dsq = d * d
    g2sum = dsq[:, 0:16]
    for g in range(1, 7):
        g2sum = g2sum + dsq[:, g * 16:(g + 1) * 16]
    var_c = jnp.sum(g2sum, axis=0, keepdims=True) / cnt                  # biased var
    var_f = jnp.concatenate([var_c] * 7, axis=1)
    y2a = _leaky_relu(d * jax.lax.rsqrt(var_f + BN_EPS) * g2_ref[...] + be2_ref[...])

    # scatter into the conv3-input scratch, even/odd h split (no padding)
    for ho in range(7):
        if ho % 2 == 0:
            r0 = (ho // 2) * N
        else:
            r0 = (4 + ho // 2) * N
        s3_ref[r0:r0 + N, :] = y2a[ho * N:(ho + 1) * N, :]

    # ---------------- conv3: 16->32, k3 s2 p0, leaky_relu ----------------
    y3 = _leaky_relu(conv3tap(s3_ref, (0, 4 * N, N), 3 * N, rhs3_ref, b3_ref))  # (3N, 96)

    # ---------------- linear1 (flatten folded into per-ho weight blocks) ----------------
    h1 = None
    for ho in range(3):
        t = jnp.dot(y3[ho * N:(ho + 1) * N, :], w1s_ref[ho],
                    preferred_element_type=f32)
        h1 = t if h1 is None else h1 + t
    h1 = _leaky_relu(h1 + bl1_ref[...])                                  # (N, 128)

    # ---------------- merged mu / log_sigma, reparameterize, KL ----------------
    m = jnp.dot(h1, w23_ref[...], preferred_element_type=f32) + b23_ref[...]   # (N, 2L)
    mu = m[:, 0:L]
    log_sigma = m[:, L:2 * L]
    sigma = jnp.exp(log_sigma)
    z_ref[...] = mu + sigma * eps_ref[...]
    kl_mat = sigma * sigma + mu * mu - log_sigma - 0.5
    kl_ref[...] = jnp.sum(kl_mat, axis=1, keepdims=True).sum(axis=0, keepdims=True)


# ------------------------------ glue: weight restructuring ------------------------------

def _build_conv_rhs(w, col_order, pos_of_w, n_pos):
    """Build the 3 block-banded matmul weights for a stride-2 3x3 conv.

    w          : torch-layout conv weight (Cout, Cin, 3, 3)
    col_order  : output wo for each output column group p (chosen to match the
                 lane layout the NEXT layer's input scratch wants)
    pos_of_w   : maps a padded input column w to its lane-block position in the
                 stored input row
    n_pos      : number of lane blocks in the stored input row
    Returns rhs of shape (3, n_pos*Cin, len(col_order)*Cout); rhs[kh] is consumed
    against the input row at padded h = 2*ho + kh.
    """
    Cout, Cin = w.shape[0], w.shape[1]
    Wout = len(col_order)
    P = np.zeros((n_pos, Wout, 3), np.float32)
    for p, wo in enumerate(col_order):
        for kw in range(3):
            P[pos_of_w(2 * wo + kw), p, kw] = 1.0
    rhs = jnp.einsum('spk,oihk->hsipo', jnp.asarray(P), w)   # (3, n_pos, Cin, Wout, Cout)
    return rhs.reshape(3, n_pos * Cin, Wout * Cout)


def init_params(key, latent_dims):
    ks = jax.random.split(key, 14)
    s = 0.05
    f32 = jnp.float32
    p = {
        "w1": s * jax.random.normal(ks[0], (8, 1, 3, 3), f32),
        "b1": s * jax.random.normal(ks[1], (8,), f32),
        "w2": s * jax.random.normal(ks[2], (16, 8, 3, 3), f32),
        "b2": s * jax.random.normal(ks[3], (16,), f32),
        "gamma": 1.0 + 0.1 * jax.random.normal(ks[4], (16,), f32),
        "beta": 0.1 * jax.random.normal(ks[5], (16,), f32),
        "w3": s * jax.random.normal(ks[6], (32, 16, 3, 3), f32),
        "b3": s * jax.random.normal(ks[7], (32,), f32),
        "wl1": s * jax.random.normal(ks[8], (128, 288), f32),
        "bl1": s * jax.random.normal(ks[9], (128,), f32),
        "wl2": s * jax.random.normal(ks[10], (latent_dims, 128), f32),
        "bl2": s * jax.random.normal(ks[11], (latent_dims,), f32),
        "wl3": s * jax.random.normal(ks[12], (latent_dims, 128), f32),
        "bl3": s * jax.random.normal(ks[13], (latent_dims,), f32),
    }
    return p


def vae_encoder_forward(x, params, eps):
    """x: [N,1,28,28] float32 NCHW (PyTorch convention). Returns (z [N,L], kl scalar)."""
    N = x.shape[0]
    L = params["wl2"].shape[0]
    f32 = jnp.float32

    # ---- input layout: pad to 30x30, even/odd split of W (lanes) and H (rows) ----
    xp = jnp.pad(x[:, 0].astype(f32), ((0, 0), (1, 1), (1, 1)))            # (N, 30, 30)
    xw = jnp.concatenate([xp[:, :, 0::2], xp[:, :, 1::2]], axis=2)          # lanes [evenW|oddW]
    x_lay = jnp.concatenate(
        [xw[:, 0::2].transpose(1, 0, 2).reshape(15 * N, 30),
         xw[:, 1::2].transpose(1, 0, 2).reshape(15 * N, 30)], axis=0)       # (30N, 30)

    # ---- structured (block-banded) conv weights; column orders chosen so each
    #      conv's output lands directly in the next layer's input layout ----
    col1 = [1, 3, 5, 7, 9, 11, 13, 0, 2, 4, 6, 8, 10, 12]   # -> conv2 input (padded W=16)
    col2 = [0, 2, 4, 6, 1, 3, 5]                            # -> conv3 input (W=7)
    col3 = [0, 1, 2]
    pos1 = lambda w: (w // 2) if w % 2 == 0 else 15 + w // 2                 # x_lay lanes
    pos2 = lambda w: 14 if w == 0 else (15 if w == 15 else                   # s2 lanes
                                        ((w // 2 - 1) if w % 2 == 0 else 7 + w // 2))
    pos3 = lambda w: (w // 2) if w % 2 == 0 else 4 + w // 2                  # s3 lanes
    rhs1 = _build_conv_rhs(params["w1"], col1, pos1, 30)     # (3, 30, 112)
    rhs2 = _build_conv_rhs(params["w2"], col2, pos2, 16)     # (3, 128, 112)
    rhs3 = _build_conv_rhs(params["w3"], col3, pos3, 7)      # (3, 112, 96)

    b1f = jnp.tile(params["b1"], 14)[None, :]                # (1, 112)
    b2f = jnp.tile(params["b2"], 7)[None, :]
    gf = jnp.tile(params["gamma"], 7)[None, :]
    bef = jnp.tile(params["beta"], 7)[None, :]
    b3f = jnp.tile(params["b3"], 3)[None, :]                 # (1, 96)

    # linear1 weight re-blocked to consume conv3's (rows=(ho,n), lanes=(wo,co)) output;
    # torch flatten index of NCHW (32,3,3) is c*9 + h*3 + w.
    idx = np.array([[[co * 9 + ho * 3 + wo for co in range(32)]
                     for wo in range(3)] for ho in range(3)], np.int32)
    w1s = params["wl1"].T[idx.reshape(-1)].reshape(3, 96, 128)
    bl1f = params["bl1"][None, :]

    # merged mu / log_sigma head
    w23 = jnp.concatenate([params["wl2"].T, params["wl3"].T], axis=1)        # (128, 2L)
    b23 = jnp.concatenate([params["bl2"], params["bl3"]])[None, :]

    kernel = partial(fused_encoder_kernel, N=N, L=L)
    z, kl = pl.pallas_call(
        kernel,
        out_shape=(jax.ShapeDtypeStruct((N, L), f32),
                   jax.ShapeDtypeStruct((1, 1), f32)),
        in_specs=[_vmem()] * 14,
        out_specs=(_vmem(), _vmem()),
        scratch_shapes=[pltpu.VMEM((16 * N, 128), f32),      # conv2 input (padded)
                        pltpu.VMEM((7 * N, 112), f32)],      # conv3 input
    )(x_lay, rhs1, b1f, rhs2, b2f, gf, bef, rhs3, b3f, w1s, bl1f, w23, b23, eps)
    return z, kl[0, 0]


# ------------------------------ pure-JAX reference ------------------------------

def reference_forward(x, params, eps):
    def conv(x, w, b, stride, pad):
        y = jax.lax.conv_general_dilated(
            x, w, (stride, stride), [(pad, pad), (pad, pad)],
            dimension_numbers=("NCHW", "OIHW", "NCHW"))
        return y + b[None, :, None, None]

    y = _leaky_relu(conv(x, params["w1"], params["b1"], 2, 1))
    y = conv(y, params["w2"], params["b2"], 2, 1)
    mean = jnp.mean(y, axis=(0, 2, 3), keepdims=True)
    var = jnp.var(y, axis=(0, 2, 3), keepdims=True)                 # biased
    y = (y - mean) * jax.lax.rsqrt(var + BN_EPS)
    y = _leaky_relu(y * params["gamma"][None, :, None, None]
                    + params["beta"][None, :, None, None])
    y = _leaky_relu(conv(y, params["w3"], params["b3"], 2, 0))
    h = y.reshape(y.shape[0], -1)
    h1 = _leaky_relu(h @ params["wl1"].T + params["bl1"])
    mu = h1 @ params["wl2"].T + params["bl2"]
    ls = h1 @ params["wl3"].T + params["bl3"]
    sigma = jnp.exp(ls)
    z = mu + sigma * eps
    kl = jnp.sum(sigma ** 2 + mu ** 2 - ls - 0.5)
    return z, kl


if __name__ == "__main__":
    latent_dims = 8
    N = 2
    key = jax.random.PRNGKey(0)
    k_x, k_p, k_eps = jax.random.split(key, 3)

    x = jax.random.normal(k_x, (N, 1, 28, 28), jnp.float32)        # MNIST-sized input
    params = init_params(k_p, latent_dims)
    # TODO(synk): torch.distributions.Normal(0,1).sample is stochastic; we pass
    # deterministic standard-normal noise generated with jax.random instead.
    eps = jax.random.normal(k_eps, (N, latent_dims), jnp.float32)

    fwd = jax.jit(vae_encoder_forward)
    z, kl = fwd(x, params, eps)
    jax.block_until_ready((z, kl))

    z_ref, kl_ref = jax.jit(reference_forward)(x, params, eps)
    jax.block_until_ready((z_ref, kl_ref))

    assert z.shape == (N, latent_dims) and z.dtype == jnp.float32
    assert kl.shape == () and bool(jnp.isfinite(kl))
    assert bool(jnp.allclose(z, z_ref, atol=3e-2, rtol=3e-2))
    assert bool(jnp.allclose(kl, kl_ref, atol=5e-1, rtol=3e-2))
    print("KERNEL_OK")
</pallas_src>

<mosaic_0001>
module attributes {stable_mosaic.version = 11 : i64} {
  func.func @fused_encoder_kernel(%arg0: memref<60x30xf32, #tpu.memory_space<vmem>>, %arg1: memref<3x30x112xf32, #tpu.memory_space<vmem>>, %arg2: memref<1x112xf32, #tpu.memory_space<vmem>>, %arg3: memref<3x128x112xf32, #tpu.memory_space<vmem>>, %arg4: memref<1x112xf32, #tpu.memory_space<vmem>>, %arg5: memref<1x112xf32, #tpu.memory_space<vmem>>, %arg6: memref<1x112xf32, #tpu.memory_space<vmem>>, %arg7: memref<3x112x96xf32, #tpu.memory_space<vmem>>, %arg8: memref<1x96xf32, #tpu.memory_space<vmem>>, %arg9: memref<3x96x128xf32, #tpu.memory_space<vmem>>, %arg10: memref<1x128xf32, #tpu.memory_space<vmem>>, %arg11: memref<128x16xf32, #tpu.memory_space<vmem>>, %arg12: memref<1x16xf32, #tpu.memory_space<vmem>>, %arg13: memref<2x8xf32, #tpu.memory_space<vmem>>, %arg14: memref<2x8xf32, #tpu.memory_space<vmem>>, %arg15: memref<1x1xf32, #tpu.memory_space<vmem>>, %arg16: memref<32x128xf32, #tpu.memory_space<vmem>>, %arg17: memref<14x112xf32, #tpu.memory_space<vmem>>) attributes {dimension_semantics = [], scalar_prefetch = 0 : i64, scratch_operands = 2 : i64, tpu.core_type = #tpu.core_type<tc>} {
    %c0 = arith.constant 0 : index
    %c0_0 = arith.constant 0 : index
    %0 = vector.load %arg0[%c0, %c0_0] : memref<60x30xf32, #tpu.memory_space<vmem>>, vector<28x30xf32>
    %c0_1 = arith.constant 0 : index
    %c0_2 = arith.constant 0 : index
    %c0_3 = arith.constant 0 : index
    %1 = vector.load %arg1[%c0_1, %c0_2, %c0_3] : memref<3x30x112xf32, #tpu.memory_space<vmem>>, vector<1x30x112xf32>
    %2 = vector.shape_cast %1 : vector<1x30x112xf32> to vector<30x112xf32>
    %cst = arith.constant dense<0.000000e+00> : vector<28x112xf32>
    %3 = tpu.matmul %0, %2, %cst {dimension_numbers = #tpu.dot_dimension_numbers<[1], [0], [0], [1], [0, 0, 1, 1], [], []>} : vector<28x30xf32>, vector<30x112xf32>, vector<28x112xf32> -> vector<28x112xf32>
    %c30 = arith.constant 30 : index
    %c0_4 = arith.constant 0 : index
    %4 = vector.load %arg0[%c30, %c0_4] : memref<60x30xf32, #tpu.memory_space<vmem>>, vector<28x30xf32>
    %c1 = arith.constant 1 : index
    %c0_5 = arith.constant 0 : index
    %c0_6 = arith.constant 0 : index
    %5 = vector.load %arg1[%c1, %c0_5, %c0_6] : memref<3x30x112xf32, #tpu.memory_space<vmem>>, vector<1x30x112xf32>
    %6 = vector.shape_cast %5 : vector<1x30x112xf32> to vector<30x112xf32>
    %cst_7 = arith.constant dense<0.000000e+00> : vector<28x112xf32>
    %7 = tpu.matmul %4, %6, %cst_7 {dimension_numbers = #tpu.dot_dimension_numbers<[1], [0], [0], [1], [0, 0, 1, 1], [], []>} : vector<28x30xf32>, vector<30x112xf32>, vector<28x112xf32> -> vector<28x112xf32>
    %8 = arith.addf %3, %7 : vector<28x112xf32>
    %c2 = arith.constant 2 : index
    %c0_8 = arith.constant 0 : index
    %9 = vector.load %arg0[%c2, %c0_8] : memref<60x30xf32, #tpu.memory_space<vmem>>, vector<28x30xf32>
    %c2_9 = arith.constant 2 : index
    %c0_10 = arith.constant 0 : index
    %c0_11 = arith.constant 0 : index
    %10 = vector.load %arg1[%c2_9, %c0_10, %c0_11] : memref<3x30x112xf32, #tpu.memory_space<vmem>>, vector<1x30x112xf32>
    %11 = vector.shape_cast %10 : vector<1x30x112xf32> to vector<30x112xf32>
    %cst_12 = arith.constant dense<0.000000e+00> : vector<28x112xf32>
    %12 = tpu.matmul %9, %11, %cst_12 {dimension_numbers = #tpu.dot_dimension_numbers<[1], [0], [0], [1], [0, 0, 1, 1], [], []>} : vector<28x30xf32>, vector<30x112xf32>, vector<28x112xf32> -> vector<28x112xf32>
    %13 = arith.addf %8, %12 : vector<28x112xf32>
    %c0_13 = arith.constant 0 : index
    %c0_14 = arith.constant 0 : index
    %14 = vector.load %arg2[%c0_13, %c0_14] : memref<1x112xf32, #tpu.memory_space<vmem>>, vector<1x112xf32>
    %15 = vector.broadcast %14 : vector<1x112xf32> to vector<28x112xf32>
    %16 = arith.addf %13, %15 : vector<28x112xf32>
    %cst_15 = arith.constant 0.000000e+00 : f32
    %17 = vector.broadcast %cst_15 : f32 to vector<28x112xf32>
    %18 = arith.cmpf ogt, %16, %17 : vector<28x112xf32>
    %cst_16 = arith.constant 0.00999999977 : f32
    %19 = vector.broadcast %cst_16 : f32 to vector<28x112xf32>
    %20 = arith.mulf %19, %16 : vector<28x112xf32>
    %21 = arith.select %18, %16, %20 : vector<28x112xi1>, vector<28x112xf32>
    %cst_17 = arith.constant 0.000000e+00 : f32
    %22 = vector.broadcast %cst_17 : f32 to vector<32x128xf32>
    %c0_18 = arith.constant 0 : index
    %c0_19 = arith.constant 0 : index
    %23 = vector.load %arg16[%c0_18, %c0_19] : memref<32x128xf32, #tpu.memory_space<vmem>>, vector<32x128xf32>
    tpu.vector_store %arg16[%c0_18, %c0_19], %22 {strides = array<i32>} : memref<32x128xf32, #tpu.memory_space<vmem>>, vector<32x128xf32>,
    %24 = vector.extract_strided_slice %21 {offsets = [0, 0], sizes = [2, 112], strides = [1, 1]} : vector<28x112xf32> to vector<2x112xf32>
    %c16 = arith.constant 16 : index
    %c0_20 = arith.constant 0 : index
    %25 = vector.load %arg16[%c16, %c0_20] : memref<32x128xf32, #tpu.memory_space<vmem>>, vector<2x112xf32>
    tpu.vector_store %arg16[%c16, %c0_20], %24 {strides = array<i32>} : memref<32x128xf32, #tpu.memory_space<vmem>>, vector<2x112xf32>,
    %26 = vector.extract_strided_slice %21 {offsets = [2, 0], sizes = [2, 112], strides = [1, 1]} : vector<28x112xf32> to vector<2x112xf32>
    %c2_21 = arith.constant 2 : index
    %c0_22 = arith.constant 0 : index
    %27 = vector.load %arg16[%c2_21, %c0_22] : memref<32x128xf32, #tpu.memory_space<vmem>>, vector<2x112xf32>
    tpu.vector_store %arg16[%c2_21, %c0_22], %26 {strides = array<i32>} : memref<32x128xf32, #tpu.memory_space<vmem>>, vector<2x112xf32>,
    %28 = vector.extract_strided_slice %21 {offsets = [4, 0], sizes = [2, 112], strides = [1, 1]} : vector<28x112xf32> to vector<2x112xf32>
    %c18 = arith.constant 18 : index
    %c0_23 = arith.constant 0 : index
    %29 = vector.load %arg16[%c18, %c0_23] : memref<32x128xf32, #tpu.memory_space<vmem>>, vector<2x112xf32>
    tpu.vector_store %arg16[%c18, %c0_23], %28 {strides = array<i32>} : memref<32x128xf32, #tpu.memory_space<vmem>>, vector<2x112xf32>,
    %30 = vector.extract_strided_slice %21 {offsets = [6, 0], sizes = [2, 112], strides = [1, 1]} : vector<28x112xf32> to vector<2x112xf32>
    %c4 = arith.constant 4 : index
    %c0_24 = arith.constant 0 : index
    %31 = vector.load %arg16[%c4, %c0_24] : memref<32x128xf32, #tpu.memory_space<vmem>>, vector<2x112xf32>
    tpu.vector_store %arg16[%c4, %c0_24], %30 {strides = array<i32>} : memref<32x128xf32, #tpu.memory_space<vmem>>, vector<2x112xf32>,
    %32 = vector.extract_strided_slice %21 {offsets = [8, 0], sizes = [2, 112], strides = [1, 1]} : vector<28x112xf32> to vector<2x112xf32>
    %c20 = arith.constant 20 : index
    %c0_25 = arith.constant 0 : index
    %33 = vector.load %arg16[%c20, %c0_25] : memref<32x128xf32, #tpu.memory_space<vmem>>, vector<2x112xf32>
    tpu.vector_store %arg16[%c20, %c0_25], %32 {strides = array<i32>} : memref<32x128xf32, #tpu.memory_space<vmem>>, vector<2x112xf32>,
    %34 = vector.extract_strided_slice %21 {offsets = [10, 0], sizes = [2, 112], strides = [1, 1]} : vector<28x112xf32> to vector<2x112xf32>
    %c6 = arith.constant 6 : index
    %c0_26 = arith.constant 0 : index
    %35 = vector.load %arg16[%c6, %c0_26] : memref<32x128xf32, #tpu.memory_space<vmem>>, vector<2x112xf32>
    tpu.vector_store %arg16[%c6, %c0_26], %34 {strides = array<i32>} : memref<32x128xf32, #tpu.memory_space<vmem>>, vector<2x112xf32>,
    %36 = vector.extract_strided_slice %21 {offsets = [12, 0], sizes = [2, 112], strides = [1, 1]} : vector<28x112xf32> to vector<2x112xf32>
    %c22 = arith.constant 22 : index
    %c0_27 = arith.constant 0 : index
    %37 = vector.load %arg16[%c22, %c0_27] : memref<32x128xf32, #tpu.memory_space<vmem>>, vector<2x112xf32>
    tpu.vector_store %arg16[%c22, %c0_27], %36 {strides = array<i32>} : memref<32x128xf32, #tpu.memory_space<vmem>>, vector<2x112xf32>,
    %38 = vector.extract_strided_slice %21 {offsets = [14, 0], sizes = [2, 112], strides = [1, 1]} : vector<28x112xf32> to vector<2x112xf32>
    %c8 = arith.constant 8 : index
    %c0_28 = arith.constant 0 : index
    %39 = vector.load %arg16[%c8, %c0_28] : memref<32x128xf32, #tpu.memory_space<vmem>>, vector<2x112xf32>
    tpu.vector_store %arg16[%c8, %c0_28], %38 {strides = array<i32>} : memref<32x128xf32, #tpu.memory_space<vmem>>, vector<2x112xf32>,
    %40 = vector.extract_strided_slice %21 {offsets = [16, 0], sizes = [2, 112], strides = [1, 1]} : vector<28x112xf32> to vector<2x112xf32>
    %c24 = arith.constant 24 : index
    %c0_29 = arith.constant 0 : index
    %41 = vector.load %arg16[%c24, %c0_29] : memref<32x128xf32, #tpu.memory_space<vmem>>, vector<2x112xf32>
    tpu.vector_store %arg16[%c24, %c0_29], %40 {strides = array<i32>} : memref<32x128xf32, #tpu.memory_space<vmem>>, vector<2x112xf32>,
    %42 = vector.extract_strided_slice %21 {offsets = [18, 0], sizes = [2, 112], strides = [1, 1]} : vector<28x112xf32> to vector<2x112xf32>
    %c10 = arith.constant 10 : index
    %c0_30 = arith.constant 0 : index
    %43 = vector.load %arg16[%c10, %c0_30] : memref<32x128xf32, #tpu.memory_space<vmem>>, vector<2x112xf32>
    tpu.vector_store %arg16[%c10, %c0_30], %42 {strides = array<i32>} : memref<32x128xf32, #tpu.memory_space<vmem>>, vector<2x112xf32>,
    %44 = vector.extract_strided_slice %21 {offsets = [20, 0], sizes = [2, 112], strides = [1, 1]} : vector<28x112xf32> to vector<2x112xf32>
    %c26 = arith.constant 26 : index
    %c0_31 = arith.constant 0 : index
    %45 = vector.load %arg16[%c26, %c0_31] : memref<32x128xf32, #tpu.memory_space<vmem>>, vector<2x112xf32>
    tpu.vector_store %arg16[%c26, %c0_31], %44 {strides = array<i32>} : memref<32x128xf32, #tpu.memory_space<vmem>>, vector<2x112xf32>,
    %46 = vector.extract_strided_slice %21 {offsets = [22, 0], sizes = [2, 112], strides = [1, 1]} : vector<28x112xf32> to vector<2x112xf32>
    %c12 = arith.constant 12 : index
    %c0_32 = arith.constant 0 : index
    %47 = vector.load %arg16[%c12, %c0_32] : memref<32x128xf32, #tpu.memory_space<vmem>>, vector<2x112xf32>
    tpu.vector_store %arg16[%c12, %c0_32], %46 {strides = array<i32>} : memref<32x128xf32, #tpu.memory_space<vmem>>, vector<2x112xf32>,
    %48 = vector.extract_strided_slice %21 {offsets = [24, 0], sizes = [2, 112], strides = [1, 1]} : vector<28x112xf32> to vector<2x112xf32>
    %c28 = arith.constant 28 : index
    %c0_33 = arith.constant 0 : index
    %49 = vector.load %arg16[%c28, %c0_33] : memref<32x128xf32, #tpu.memory_space<vmem>>, vector<2x112xf32>
    tpu.vector_store %arg16[%c28, %c0_33], %48 {strides = array<i32>} : memref<32x128xf32, #tpu.memory_space<vmem>>, vector<2x112xf32>,
    %50 = vector.extract_strided_slice %21 {offsets = [26, 0], sizes = [2, 112], strides = [1, 1]} : vector<28x112xf32> to vector<2x112xf32>
    %c14 = arith.constant 14 : index
    %c0_34 = arith.constant 0 : index
    %51 = vector.load %arg16[%c14, %c0_34] : memref<32x128xf32, #tpu.memory_space<vmem>>, vector<2x112xf32>
    tpu.vector_store %arg16[%c14, %c0_34], %50 {strides = array<i32>} : memref<32x128xf32, #tpu.memory_space<vmem>>, vector<2x112xf32>,
    %c0_35 = arith.constant 0 : index
    %c0_36 = arith.constant 0 : index
    %52 = vector.load %arg16[%c0_35, %c0_36] : memref<32x128xf32, #tpu.memory_space<vmem>>, vector<14x128xf32>
    %c0_37 = arith.constant 0 : index
    %c0_38 = arith.constant 0 : index
    %c0_39 = arith.constant 0 : index
    %53 = vector.load %arg3[%c0_37, %c0_38, %c0_39] : memref<3x128x112xf32, #tpu.memory_space<vmem>>, vector<1x128x112xf32>
    %54 = vector.shape_cast %53 : vector<1x128x112xf32> to vector<128x112xf32>
    %cst_40 = arith.constant dense<0.000000e+00> : vector<14x112xf32>
    %55 = tpu.matmul %52, %54, %cst_40 {dimension_numbers = #tpu.dot_dimension_numbers<[1], [0], [0], [1], [0, 0, 1, 1], [], []>} : vector<14x128xf32>, vector<128x112xf32>, vector<14x112xf32> -> vector<14x112xf32>
    %c16_41 = arith.constant 16 : index
    %c0_42 = arith.constant 0 : index
    %56 = vector.load %arg16[%c16_41, %c0_42] : memref<32x128xf32, #tpu.memory_space<vmem>>, vector<14x128xf32>
    %c1_43 = arith.constant 1 : index
    %c0_44 = arith.constant 0 : index
    %c0_45 = arith.constant 0 : index
    %57 = vector.load %arg3[%c1_43, %c0_44, %c0_45] : memref<3x128x112xf32, #tpu.memory_space<vmem>>, vector<1x128x112xf32>
    %58 = vector.shape_cast %57 : vector<1x128x112xf32> to vector<128x112xf32>
    %cst_46 = arith.constant dense<0.000000e+00> : vector<14x112xf32>
    %59 = tpu.matmul %56, %58, %cst_46 {dimension_numbers = #tpu.dot_dimension_numbers<[1], [0], [0], [1], [0, 0, 1, 1], [], []>} : vector<14x128xf32>, vector<128x112xf32>, vector<14x112xf32> -> vector<14x112xf32>
    %60 = arith.addf %55, %59 : vector<14x112xf32>
    %c2_47 = arith.constant 2 : index
    %c0_48 = arith.constant 0 : index
    %61 = vector.load %arg16[%c2_47, %c0_48] : memref<32x128xf32, #tpu.memory_space<vmem>>, vector<14x128xf32>
    %c2_49 = arith.constant 2 : index
    %c0_50 = arith.constant 0 : index
    %c0_51 = arith.constant 0 : index
    %62 = vector.load %arg3[%c2_49, %c0_50, %c0_51] : memref<3x128x112xf32, #tpu.memory_space<vmem>>, vector<1x128x112xf32>
    %63 = vector.shape_cast %62 : vector<1x128x112xf32> to vector<128x112xf32>
    %cst_52 = arith.constant dense<0.000000e+00> : vector<14x112xf32>
    %64 = tpu.matmul %61, %63, %cst_52 {dimension_numbers = #tpu.dot_dimension_numbers<[1], [0], [0], [1], [0, 0, 1, 1], [], []>} : vector<14x128xf32>, vector<128x112xf32>, vector<14x112xf32> -> vector<14x112xf32>
    %65 = arith.addf %60, %64 : vector<14x112xf32>
    %c0_53 = arith.constant 0 : index
    %c0_54 = arith.constant 0 : index
    %66 = vector.load %arg4[%c0_53, %c0_54] : memref<1x112xf32, #tpu.memory_space<vmem>>, vector<1x112xf32>
    %67 = vector.broadcast %66 : vector<1x112xf32> to vector<14x112xf32>
    %68 = arith.addf %65, %67 : vector<14x112xf32>
    %69 = vector.extract_strided_slice %68 {offsets = [0, 0], sizes = [14, 16], strides = [1, 1]} : vector<14x112xf32> to vector<14x16xf32>
    %70 = vector.extract_strided_slice %68 {offsets = [0, 16], sizes = [14, 16], strides = [1, 1]} : vector<14x112xf32> to vector<14x16xf32>
    %71 = arith.addf %69, %70 : vector<14x16xf32>
    %72 = vector.extract_strided_slice %68 {offsets = [0, 32], sizes = [14, 16], strides = [1, 1]} : vector<14x112xf32> to vector<14x16xf32>
    %73 = arith.addf %71, %72 : vector<14x16xf32>
    %74 = vector.extract_strided_slice %68 {offsets = [0, 48], sizes = [14, 16], strides = [1, 1]} : vector<14x112xf32> to vector<14x16xf32>
    %75 = arith.addf %73, %74 : vector<14x16xf32>
    %76 = vector.extract_strided_slice %68 {offsets = [0, 64], sizes = [14, 16], strides = [1, 1]} : vector<14x112xf32> to vector<14x16xf32>
    %77 = arith.addf %75, %76 : vector<14x16xf32>
    %78 = vector.extract_strided_slice %68 {offsets = [0, 80], sizes = [14, 16], strides = [1, 1]} : vector<14x112xf32> to vector<14x16xf32>
    %79 = arith.addf %77, %78 : vector<14x16xf32>
    %80 = vector.extract_strided_slice %68 {offsets = [0, 96], sizes = [14, 16], strides = [1, 1]} : vector<14x112xf32> to vector<14x16xf32>
    %81 = arith.addf %79, %80 : vector<14x16xf32>
    %cst_55 = arith.constant dense<0.000000e+00> : vector<16xf32>
    %82 = vector.multi_reduction <add>, %81, %cst_55 [0] : vector<14x16xf32> to vector<16xf32>
    %83 = vector.shape_cast %82 : vector<16xf32> to vector<1x16xf32>
    %cst_56 = arith.constant 9.800000e+01 : f32
    %84 = vector.broadcast %cst_56 : f32 to vector<1x16xf32>
    %85 = arith.divf %83, %84 : vector<1x16xf32>
    %86 = tpu.concatenate %85, %85, %85, %85, %85, %85, %85 in 1 : vector<1x16xf32>, vector<1x16xf32>, vector<1x16xf32>, vector<1x16xf32>, vector<1x16xf32>, vector<1x16xf32>, vector<1x16xf32> -> vector<1x112xf32>
    %87 = vector.broadcast %86 : vector<1x112xf32> to vector<14x112xf32>
    %88 = arith.subf %68, %87 : vector<14x112xf32>
    %89 = arith.mulf %88, %88 : vector<14x112xf32>
    %90 = vector.extract_strided_slice %89 {offsets = [0, 0], sizes = [14, 16], strides = [1, 1]} : vector<14x112xf32> to vector<14x16xf32>
    %91 = vector.extract_strided_slice %89 {offsets = [0, 16], sizes = [14, 16], strides = [1, 1]} : vector<14x112xf32> to vector<14x16xf32>
    %92 = arith.addf %90, %91 : vector<14x16xf32>
    %93 = vector.extract_strided_slice %89 {offsets = [0, 32], sizes = [14, 16], strides = [1, 1]} : vector<14x112xf32> to vector<14x16xf32>
    %94 = arith.addf %92, %93 : vector<14x16xf32>
    %95 = vector.extract_strided_slice %89 {offsets = [0, 48], sizes = [14, 16], strides = [1, 1]} : vector<14x112xf32> to vector<14x16xf32>
    %96 = arith.addf %94, %95 : vector<14x16xf32>
    %97 = vector.extract_strided_slice %89 {offsets = [0, 64], sizes = [14, 16], strides = [1, 1]} : vector<14x112xf32> to vector<14x16xf32>
    %98 = arith.addf %96, %97 : vector<14x16xf32>
    %99 = vector.extract_strided_slice %89 {offsets = [0, 80], sizes = [14, 16], strides = [1, 1]} : vector<14x112xf32> to vector<14x16xf32>
    %100 = arith.addf %98, %99 : vector<14x16xf32>
    %101 = vector.extract_strided_slice %89 {offsets = [0, 96], sizes = [14, 16], strides = [1, 1]} : vector<14x112xf32> to vector<14x16xf32>
    %102 = arith.addf %100, %101 : vector<14x16xf32>
    %cst_57 = arith.constant dense<0.000000e+00> : vector<16xf32>
    %103 = vector.multi_reduction <add>, %102, %cst_57 [0] : vector<14x16xf32> to vector<16xf32>
    %104 = vector.shape_cast %103 : vector<16xf32> to vector<1x16xf32>
    %cst_58 = arith.constant 9.800000e+01 : f32
    %105 = vector.broadcast %cst_58 : f32 to vector<1x16xf32>
    %106 = arith.divf %104, %105 : vector<1x16xf32>
    %107 = tpu.concatenate %106, %106, %106, %106, %106, %106, %106 in 1 : vector<1x16xf32>, vector<1x16xf32>, vector<1x16xf32>, vector<1x16xf32>, vector<1x16xf32>, vector<1x16xf32>, vector<1x16xf32> -> vector<1x112xf32>
    %cst_59 = arith.constant 9.99999974E-6 : f32
    %108 = vector.broadcast %cst_59 : f32 to vector<1x112xf32>
    %109 = arith.addf %107, %108 : vector<1x112xf32>
    %110 = math.rsqrt %109 : vector<1x112xf32>
    %111 = vector.broadcast %110 : vector<1x112xf32> to vector<14x112xf32>
    %112 = arith.mulf %88, %111 : vector<14x112xf32>
    %c0_60 = arith.constant 0 : index
    %c0_61 = arith.constant 0 : index
    %113 = vector.load %arg5[%c0_60, %c0_61] : memref<1x112xf32, #tpu.memory_space<vmem>>, vector<1x112xf32>
    %114 = vector.broadcast %113 : vector<1x112xf32> to vector<14x112xf32>
    %115 = arith.mulf %112, %114 : vector<14x112xf32>
    %c0_62 = arith.constant 0 : index
    %c0_63 = arith.constant 0 : index
    %116 = vector.load %arg6[%c0_62, %c0_63] : memref<1x112xf32, #tpu.memory_space<vmem>>, vector<1x112xf32>
    %117 = vector.broadcast %116 : vector<1x112xf32> to vector<14x112xf32>
    %118 = arith.addf %115, %117 : vector<14x112xf32>
    %cst_64 = arith.constant 0.000000e+00 : f32
    %119 = vector.broadcast %cst_64 : f32 to vector<14x112xf32>
    %120 = arith.cmpf ogt, %118, %119 : vector<14x112xf32>
    %cst_65 = arith.constant 0.00999999977 : f32
    %121 = vector.broadcast %cst_65 : f32 to vector<14x112xf32>
    %122 = arith.mulf %121, %118 : vector<14x112xf32>
    %123 = arith.select %120, %118, %122 : vector<14x112xi1>, vector<14x112xf32>
    %124 = vector.extract_strided_slice %123 {offsets = [0, 0], sizes = [2, 112], strides = [1, 1]} : vector<14x112xf32> to vector<2x112xf32>
    %c0_66 = arith.constant 0 : index
    %c0_67 = arith.constant 0 : index
    %125 = vector.load %arg17[%c0_66, %c0_67] : memref<14x112xf32, #tpu.memory_space<vmem>>, vector<2x112xf32>
    tpu.vector_store %arg17[%c0_66, %c0_67], %124 {strides = array<i32>} : memref<14x112xf32, #tpu.memory_space<vmem>>, vector<2x112xf32>,
    %126 = vector.extract_strided_slice %123 {offsets = [2, 0], sizes = [2, 112], strides = [1, 1]} : vector<14x112xf32> to vector<2x112xf32>
    %c8_68 = arith.constant 8 : index
    %c0_69 = arith.constant 0 : index
    %127 = vector.load %arg17[%c8_68, %c0_69] : memref<14x112xf32, #tpu.memory_space<vmem>>, vector<2x112xf32>
    tpu.vector_store %arg17[%c8_68, %c0_69], %126 {strides = array<i32>} : memref<14x112xf32, #tpu.memory_space<vmem>>, vector<2x112xf32>,
    %128 = vector.extract_strided_slice %123 {offsets = [4, 0], sizes = [2, 112], strides = [1, 1]} : vector<14x112xf32> to vector<2x112xf32>
    %c2_70 = arith.constant 2 : index
    %c0_71 = arith.constant 0 : index
    %129 = vector.load %arg17[%c2_70, %c0_71] : memref<14x112xf32, #tpu.memory_space<vmem>>, vector<2x112xf32>
    tpu.vector_store %arg17[%c2_70, %c0_71], %128 {strides = array<i32>} : memref<14x112xf32, #tpu.memory_space<vmem>>, vector<2x112xf32>,
    %130 = vector.extract_strided_slice %123 {offsets = [6, 0], sizes = [2, 112], strides = [1, 1]} : vector<14x112xf32> to vector<2x112xf32>
    %c10_72 = arith.constant 10 : index
    %c0_73 = arith.constant 0 : index
    %131 = vector.load %arg17[%c10_72, %c0_73] : memref<14x112xf32, #tpu.memory_space<vmem>>, vector<2x112xf32>
    tpu.vector_store %arg17[%c10_72, %c0_73], %130 {strides = array<i32>} : memref<14x112xf32, #tpu.memory_space<vmem>>, vector<2x112xf32>,
    %132 = vector.extract_strided_slice %123 {offsets = [8, 0], sizes = [2, 112], strides = [1, 1]} : vector<14x112xf32> to vector<2x112xf32>
    %c4_74 = arith.constant 4 : index
    %c0_75 = arith.constant 0 : index
    %133 = vector.load %arg17[%c4_74, %c0_75] : memref<14x112xf32, #tpu.memory_space<vmem>>, vector<2x112xf32>
    tpu.vector_store %arg17[%c4_74, %c0_75], %132 {strides = array<i32>} : memref<14x112xf32, #tpu.memory_space<vmem>>, vector<2x112xf32>,
    %134 = vector.extract_strided_slice %123 {offsets = [10, 0], sizes = [2, 112], strides = [1, 1]} : vector<14x112xf32> to vector<2x112xf32>
    %c12_76 = arith.constant 12 : index
    %c0_77 = arith.constant 0 : index
    %135 = vector.load %arg17[%c12_76, %c0_77] : memref<14x112xf32, #tpu.memory_space<vmem>>, vector<2x112xf32>
    tpu.vector_store %arg17[%c12_76, %c0_77], %134 {strides = array<i32>} : memref<14x112xf32, #tpu.memory_space<vmem>>, vector<2x112xf32>,
    %136 = vector.extract_strided_slice %123 {offsets = [12, 0], sizes = [2, 112], strides = [1, 1]} : vector<14x112xf32> to vector<2x112xf32>
    %c6_78 = arith.constant 6 : index
    %c0_79 = arith.constant 0 : index
    %137 = vector.load %arg17[%c6_78, %c0_79] : memref<14x112xf32, #tpu.memory_space<vmem>>, vector<2x112xf32>
    tpu.vector_store %arg17[%c6_78, %c0_79], %136 {strides = array<i32>} : memref<14x112xf32, #tpu.memory_space<vmem>>, vector<2x112xf32>,
    %c0_80 = arith.constant 0 : index
    %c0_81 = arith.constant 0 : index
    %138 = vector.load %arg17[%c0_80, %c0_81] : memref<14x112xf32, #tpu.memory_space<vmem>>, vector<6x112xf32>
    %c0_82 = arith.constant 0 : index
    %c0_83 = arith.constant 0 : index
    %c0_84 = arith.constant 0 : index
    %139 = vector.load %arg7[%c0_82, %c0_83, %c0_84] : memref<3x112x96xf32, #tpu.memory_space<vmem>>, vector<1x112x96xf32>
    %140 = vector.shape_cast %139 : vector<1x112x96xf32> to vector<112x96xf32>
    %cst_85 = arith.constant dense<0.000000e+00> : vector<6x96xf32>
    %141 = tpu.matmul %138, %140, %cst_85 {dimension_numbers = #tpu.dot_dimension_numbers<[1], [0], [0], [1], [0, 0, 1, 1], [], []>} : vector<6x112xf32>, vector<112x96xf32>, vector<6x96xf32> -> vector<6x96xf32>
    %c8_86 = arith.constant 8 : index
    %c0_87 = arith.constant 0 : index
    %142 = vector.load %arg17[%c8_86, %c0_87] : memref<14x112xf32, #tpu.memory_space<vmem>>, vector<6x112xf32>
    %c1_88 = arith.constant 1 : index
    %c0_89 = arith.constant 0 : index
    %c0_90 = arith.constant 0 : index
    %143 = vector.load %arg7[%c1_88, %c0_89, %c0_90] : memref<3x112x96xf32, #tpu.memory_space<vmem>>, vector<1x112x96xf32>
    %144 = vector.shape_cast %143 : vector<1x112x96xf32> to vector<112x96xf32>
    %cst_91 = arith.constant dense<0.000000e+00> : vector<6x96xf32>
    %145 = tpu.matmul %142, %144, %cst_91 {dimension_numbers = #tpu.dot_dimension_numbers<[1], [0], [0], [1], [0, 0, 1, 1], [], []>} : vector<6x112xf32>, vector<112x96xf32>, vector<6x96xf32> -> vector<6x96xf32>
    %146 = arith.addf %141, %145 : vector<6x96xf32>
    %c2_92 = arith.constant 2 : index
    %c0_93 = arith.constant 0 : index
    %147 = vector.load %arg17[%c2_92, %c0_93] : memref<14x112xf32, #tpu.memory_space<vmem>>, vector<6x112xf32>
    %c2_94 = arith.constant 2 : index
    %c0_95 = arith.constant 0 : index
    %c0_96 = arith.constant 0 : index
    %148 = vector.load %arg7[%c2_94, %c0_95, %c0_96] : memref<3x112x96xf32, #tpu.memory_space<vmem>>, vector<1x112x96xf32>
    %149 = vector.shape_cast %148 : vector<1x112x96xf32> to vector<112x96xf32>
    %cst_97 = arith.constant dense<0.000000e+00> : vector<6x96xf32>
    %150 = tpu.matmul %147, %149, %cst_97 {dimension_numbers = #tpu.dot_dimension_numbers<[1], [0], [0], [1], [0, 0, 1, 1], [], []>} : vector<6x112xf32>, vector<112x96xf32>, vector<6x96xf32> -> vector<6x96xf32>
    %151 = arith.addf %146, %150 : vector<6x96xf32>
    %c0_98 = arith.constant 0 : index
    %c0_99 = arith.constant 0 : index
    %152 = vector.load %arg8[%c0_98, %c0_99] : memref<1x96xf32, #tpu.memory_space<vmem>>, vector<1x96xf32>
    %153 = vector.broadcast %152 : vector<1x96xf32> to vector<6x96xf32>
    %154 = arith.addf %151, %153 : vector<6x96xf32>
    %cst_100 = arith.constant 0.000000e+00 : f32
    %155 = vector.broadcast %cst_100 : f32 to vector<6x96xf32>
    %156 = arith.cmpf ogt, %154, %155 : vector<6x96xf32>
    %cst_101 = arith.constant 0.00999999977 : f32
    %157 = vector.broadcast %cst_101 : f32 to vector<6x96xf32>
    %158 = arith.mulf %157, %154 : vector<6x96xf32>
    %159 = arith.select %156, %154, %158 : vector<6x96xi1>, vector<6x96xf32>
    %160 = vector.extract_strided_slice %159 {offsets = [0, 0], sizes = [2, 96], strides = [1, 1]} : vector<6x96xf32> to vector<2x96xf32>
    %c0_102 = arith.constant 0 : index
    %c0_103 = arith.constant 0 : index
    %c0_104 = arith.constant 0 : index
    %161 = vector.load %arg9[%c0_102, %c0_103, %c0_104] : memref<3x96x128xf32, #tpu.memory_space<vmem>>, vector<1x96x128xf32>
    %162 = vector.shape_cast %161 : vector<1x96x128xf32> to vector<96x128xf32>
    %cst_105 = arith.constant dense<0.000000e+00> : vector<2x128xf32>
    %163 = tpu.matmul %160, %162, %cst_105 {dimension_numbers = #tpu.dot_dimension_numbers<[1], [0], [0], [1], [0, 0, 1, 1], [], []>} : vector<2x96xf32>, vector<96x128xf32>, vector<2x128xf32> -> vector<2x128xf32>
    %164 = vector.extract_strided_slice %159 {offsets = [2, 0], sizes = [2, 96], strides = [1, 1]} : vector<6x96xf32> to vector<2x96xf32>
    %c1_106 = arith.constant 1 : index
    %c0_107 = arith.constant 0 : index
    %c0_108 = arith.constant 0 : index
    %165 = vector.load %arg9[%c1_106, %c0_107, %c0_108] : memref<3x96x128xf32, #tpu.memory_space<vmem>>, vector<1x96x128xf32>
    %166 = vector.shape_cast %165 : vector<1x96x128xf32> to vector<96x128xf32>
    %cst_109 = arith.constant dense<0.000000e+00> : vector<2x128xf32>
    %167 = tpu.matmul %164, %166, %cst_109 {dimension_numbers = #tpu.dot_dimension_numbers<[1], [0], [0], [1], [0, 0, 1, 1], [], []>} : vector<2x96xf32>, vector<96x128xf32>, vector<2x128xf32> -> vector<2x128xf32>
    %168 = arith.addf %163, %167 : vector<2x128xf32>
    %169 = vector.extract_strided_slice %159 {offsets = [4, 0], sizes = [2, 96], strides = [1, 1]} : vector<6x96xf32> to vector<2x96xf32>
    %c2_110 = arith.constant 2 : index
    %c0_111 = arith.constant 0 : index
    %c0_112 = arith.constant 0 : index
    %170 = vector.load %arg9[%c2_110, %c0_111, %c0_112] : memref<3x96x128xf32, #tpu.memory_space<vmem>>, vector<1x96x128xf32>
    %171 = vector.shape_cast %170 : vector<1x96x128xf32> to vector<96x128xf32>
    %cst_113 = arith.constant dense<0.000000e+00> : vector<2x128xf32>
    %172 = tpu.matmul %169, %171, %cst_113 {dimension_numbers = #tpu.dot_dimension_numbers<[1], [0], [0], [1], [0, 0, 1, 1], [], []>} : vector<2x96xf32>, vector<96x128xf32>, vector<2x128xf32> -> vector<2x128xf32>
    %173 = arith.addf %168, %172 : vector<2x128xf32>
    %c0_114 = arith.constant 0 : index
    %c0_115 = arith.constant 0 : index
    %174 = vector.load %arg10[%c0_114, %c0_115] : memref<1x128xf32, #tpu.memory_space<vmem>>, vector<1x128xf32>
    %175 = vector.broadcast %174 : vector<1x128xf32> to vector<2x128xf32>
    %176 = arith.addf %173, %175 : vector<2x128xf32>
    %cst_116 = arith.constant 0.000000e+00 : f32
    %177 = vector.broadcast %cst_116 : f32 to vector<2x128xf32>
    %178 = arith.cmpf ogt, %176, %177 : vector<2x128xf32>
    %cst_117 = arith.constant 0.00999999977 : f32
    %179 = vector.broadcast %cst_117 : f32 to vector<2x128xf32>
    %180 = arith.mulf %179, %176 : vector<2x128xf32>
    %181 = arith.select %178, %176, %180 : vector<2x128xi1>, vector<2x128xf32>
    %c0_118 = arith.constant 0 : index
    %c0_119 = arith.constant 0 : index
    %182 = vector.load %arg11[%c0_118, %c0_119] : memref<128x16xf32, #tpu.memory_space<vmem>>, vector<128x16xf32>
    %cst_120 = arith.constant dense<0.000000e+00> : vector<2x16xf32>
    %183 = tpu.matmul %181, %182, %cst_120 {dimension_numbers = #tpu.dot_dimension_numbers<[1], [0], [0], [1], [0, 0, 1, 1], [], []>} : vector<2x128xf32>, vector<128x16xf32>, vector<2x16xf32> -> vector<2x16xf32>
    %c0_121 = arith.constant 0 : index
    %c0_122 = arith.constant 0 : index
    %184 = vector.load %arg12[%c0_121, %c0_122] : memref<1x16xf32, #tpu.memory_space<vmem>>, vector<1x16xf32>
    %185 = vector.broadcast %184 : vector<1x16xf32> to vector<2x16xf32>
    %186 = arith.addf %183, %185 : vector<2x16xf32>
    %187 = vector.extract_strided_slice %186 {offsets = [0, 0], sizes = [2, 8], strides = [1, 1]} : vector<2x16xf32> to vector<2x8xf32>
    %188 = vector.extract_strided_slice %186 {offsets = [0, 8], sizes = [2, 8], strides = [1, 1]} : vector<2x16xf32> to vector<2x8xf32>
    %189 = math.exp %188 : vector<2x8xf32>
    %c0_123 = arith.constant 0 : index
    %c0_124 = arith.constant 0 : index
    %190 = vector.load %arg13[%c0_123, %c0_124] : memref<2x8xf32, #tpu.memory_space<vmem>>, vector<2x8xf32>
    %191 = arith.mulf %189, %190 : vector<2x8xf32>
    %192 = arith.addf %187, %191 : vector<2x8xf32>
    %c0_125 = arith.constant 0 : index
    %c0_126 = arith.constant 0 : index
    %193 = vector.load %arg14[%c0_125, %c0_126] : memref<2x8xf32, #tpu.memory_space<vmem>>, vector<2x8xf32>
    tpu.vector_store %arg14[%c0_125, %c0_126], %192 {strides = array<i32>} : memref<2x8xf32, #tpu.memory_space<vmem>>, vector<2x8xf32>,
    %194 = arith.mulf %189, %189 : vector<2x8xf32>
    %195 = arith.mulf %187, %187 : vector<2x8xf32>
    %196 = arith.addf %194, %195 : vector<2x8xf32>
    %197 = arith.subf %196, %188 : vector<2x8xf32>
    %cst_127 = arith.constant 5.000000e-01 : f32
    %198 = vector.broadcast %cst_127 : f32 to vector<2x8xf32>
    %199 = arith.subf %197, %198 : vector<2x8xf32>
    %cst_128 = arith.constant dense<0.000000e+00> : vector<2xf32>
    %200 = vector.multi_reduction <add>, %199, %cst_128 [1] : vector<2x8xf32> to vector<2xf32>
    %201 = vector.shape_cast %200 : vector<2xf32> to vector<2x1xf32>
    %cst_129 = arith.constant dense<0.000000e+00> : vector<1xf32>
    %202 = vector.multi_reduction <add>, %201, %cst_129 [0] : vector<2x1xf32> to vector<1xf32>
    %203 = vector.shape_cast %202 : vector<1xf32> to vector<1x1xf32>
    %c0_130 = arith.constant 0 : index
    %c0_131 = arith.constant 0 : index
    %204 = vector.load %arg15[%c0_130, %c0_131] : memref<1x1xf32, #tpu.memory_space<vmem>>, vector<1x1xf32>
    tpu.vector_store %arg15[%c0_130, %c0_131], %203 {strides = array<i32>} : memref<1x1xf32, #tpu.memory_space<vmem>>, vector<1x1xf32>,
    return
  }
}

</mosaic_0001>

<bundles_post_ra>
// kernel: tile.28
= control target key start
LH: loop header
LB: loop body
LE: loop exit
PB: predicated region body
PF: predicated region fallthrough
CT: control target
= control target key end

     0   :  { %s28_s0 = inlined_call_operand.vmem [shape: f32[8], index: 0, kind: input, shape index: {}]   ;;  %s29_s1 = inlined_call_operand.vmem [shape: f32[14,8], index: 1, kind: output, shape index: {}]  }
   0x1   :  { %v4_v0 = vld [vmem:[%s28_s0] ss:$0 sm:$0xff] }
   0x2   :  { %5 = vst [vmem:[%s29_s1] sm:$0xff] %v4_v0 }
   0x3   :  { %8 = vst [vmem:[%s29_s1 + $0x8] sm:$0xff] %v4_v0 }

// kernel: tile.29
= control target key start
LH: loop header
LB: loop body
LE: loop exit
PB: predicated region body
PF: predicated region fallthrough
CT: control target
= control target key end

     0   :  { %s115_s10 = smov 104   ;;  %s116_s11 = smov 88   ;;  %vm3_vm0 = vcmask 64512   ;;  %vm9_vm1 = vcmask 917312   ;;  %vm15_vm2 = vcmask 851712   ;;  %vm21_vm3 = vcmask 786112   ;;  %s183_s0 = inlined_call_operand.vmem [shape: f32[14,8], index: 0, kind: input, shape index: {}]   ;;  %s184_s1 = inlined_call_operand.vmem [shape: f32[1,112], index: 1, kind: output, shape index: {}]  }
   0x1   :  { %v89_v0 = vld [vmem:[%s183_s0 + $0xd] sm:$0x1]   ;;  %v91_v1 = vld [vmem:[%s183_s0 + $0xb] sm:$0x1]   ;;  %v93_v2 = vld [vmem:[%s183_s0 + $0x9] sm:$0x1]  }
   0x2   :  { %7 = vrot.lane.b32.xlu0 %v89_v0, %s115_s10  ;;  %19 = vrot.lane.b32.xlu1 %v91_v1, %s116_s11  ;;  %s117_s14 = smov 72   ;;  %v90_v3 = vld [vmem:[%s183_s0 + $0xc] sm:$0x1]   ;;  %v92_v4 = vld [vmem:[%s183_s0 + $0xa] sm:$0x1]   ;;  %s118_s19 = smov 96  }
   0x3   :  { %31 = vrot.lane.b32.xlu2 %v93_v2, %s117_s14  ;;  %s119_s20 = smov 80   ;;  %v94_v5 = vld [vmem:[%s183_s0 + $0x8] sm:$0x1]   ;;  %s120_s23 = smov 64   ;;  %v95_v6 = vld [vmem:[%s183_s0 + $0x7] sm:$0x1]  }
   0x4   :  { %v96_v7 = vld [vmem:[%s183_s0 + $0x6] sm:$0x1]   ;;  %s121_s28 = smov 56   ;;  %s122_s29 = smov 48   ;;  %v97_v8 = vld [vmem:[%s183_s0 + $0x5] sm:$0x1]  }
   0x5   :  { %s123_s3 = smov 40   ;;  %v98_v9 = vld [vmem:[%s183_s0 + $0x4] sm:$0x1]   ;;  %v99_v10 = vld [vmem:[%s183_s0 + $0x3] sm:$0x1]   ;;  %s124_s8 = smov 32  }
   0x6   :  { %s125_s9 = smov 24   ;;  %v100_v11 = vld [vmem:[%s183_s0 + $0x2] sm:$0x1]   ;;  %s126_s12 = smov 16   ;;  %v101_v12 = vld [vmem:[%s183_s0 + $0x1] sm:$0x1]  }
   0x7   :  { %s127_s15 = smov 8   ;;  %v2_v13 = vld [vmem:[%s183_s0] sm:$0x1]   ;;  %vm27_vm4 = vcmask 720512   ;;  %vm33_vm5 = vcmask 654912   ;;  %vm39_vm6 = vcmask 589312  }
   0x8   :  { %4 = vst.msk [vmem:[#allocation0] sm:$0x1] %vm3_vm0, %v2_v13   ;;  %vm45_vm7 = vcmask 523712   ;;  %vm51_vm8 = vcmask 458112   ;;  %vm57_vm9 = vcmask 392512   ;;  %vm63_vm10 = vcmask 326912  }
   0x9   :  { %vm69_vm11 = vcmask 261312   ;;  %vm75_vm12 = vcmask 195712   ;;  %vm81_vm13 = vcmask 130112  }
   0xa   :  { %13 = vrot.lane.b32.xlu0 %v90_v3, %s118_s19  ;;  %25 = vrot.lane.b32.xlu1 %v92_v4, %s119_s20 }
   0xb   :  { %37 = vrot.lane.b32.xlu2 %v94_v5, %s120_s23 }
  0x12   :  { %43 = vrot.lane.b32.xlu0 %v95_v6, %s121_s28  ;;  %49 = vrot.lane.b32.xlu1 %v96_v7, %s122_s29 }
  0x13   :  { %55 = vrot.lane.b32.xlu2 %v97_v8, %s123_s3 }
  0x1a   :  { %61 = vrot.lane.b32.xlu0 %v98_v9, %s124_s8  ;;  %67 = vrot.lane.b32.xlu1 %v99_v10, %s125_s9 }
  0x1b   :  { %73 = vrot.lane.b32.xlu2 %v100_v11, %s126_s12 }
  0x22   :  { %79 = vrot.lane.b32.xlu0 %v101_v12, %s127_s15 }
  0x5d   :  { %v32_v14 = vpop.permute.xlu2 %31  }
  0x65   :  { %v38_v15 = vpop.permute.xlu2 %37  }
  0x6d   :  { %v56_v16 = vpop.permute.xlu2 %55  }
  0x74   :  { %v8_v17 = vpop.permute.xlu0 %7   ;;  %v20_v18 = vpop.permute.xlu1 %19  }
  0x75   :  { %10 = vst.msk [vmem:[#allocation0] sm:$0x1] %vm9_vm1, %v8_v17   ;;  %v74_v19 = vpop.permute.xlu2 %73  }
  0x7c   :  { %v14_v20 = vpop.permute.xlu0 %13   ;;  %v26_v21 = vpop.permute.xlu1 %25  }
  0x7d   :  { %16 = vst.msk [vmem:[#allocation0] sm:$0x1] %vm15_vm2, %v14_v20  }
  0x7e   :  { %22 = vst.msk [vmem:[#allocation0] sm:$0x1] %vm21_vm3, %v20_v18  }
  0x7f   :  { %28 = vst.msk [vmem:[#allocation0] sm:$0x1] %vm27_vm4, %v26_v21  }
  0x80   :  { %34 = vst.msk [vmem:[#allocation0] sm:$0x1] %vm33_vm5, %v32_v14  }
  0x81   :  { %40 = vst.msk [vmem:[#allocation0] sm:$0x1] %vm39_vm6, %v38_v15  }
  0x84   :  { %v44_v22 = vpop.permute.xlu0 %43   ;;  %v50_v23 = vpop.permute.xlu1 %49  }
  0x85   :  { %46 = vst.msk [vmem:[#allocation0] sm:$0x1] %vm45_vm7, %v44_v22  }
  0x86   :  { %52 = vst.msk [vmem:[#allocation0] sm:$0x1] %vm51_vm8, %v50_v23  }
  0x87   :  { %58 = vst.msk [vmem:[#allocation0] sm:$0x1] %vm57_vm9, %v56_v16  }
  0x8c   :  { %v62_v24 = vpop.permute.xlu0 %61   ;;  %v68_v25 = vpop.permute.xlu1 %67  }
  0x8d   :  { %64 = vst.msk [vmem:[#allocation0] sm:$0x1] %vm63_vm10, %v62_v24  }
  0x8e   :  { %70 = vst.msk [vmem:[#allocation0] sm:$0x1] %vm69_vm11, %v68_v25  }
  0x8f   :  { %76 = vst.msk [vmem:[#allocation0] sm:$0x1] %vm75_vm12, %v74_v19  }
  0x94   :  { %v80_v26 = vpop.permute.xlu0 %79  }
  0x95   :  { %82 = vst.msk [vmem:[#allocation0] sm:$0x1] %vm81_vm13, %v80_v26  }
  0x9c   :  { %v85_v27 = vld [vmem:[#allocation0] sm:$0x1] }
  0x9d   :  { %88 = vst [vmem:[%s184_s1] sm:$0x1] %v85_v27 }

// kernel: tile.33
= control target key start
LH: loop header
LB: loop body
LE: loop exit
PB: predicated region body
PF: predicated region fallthrough
CT: control target
= control target key end

     0   :  { %s22_s0 = inlined_call_operand.vmem [shape: f32[16], index: 0, kind: input, shape index: {}]   ;;  %s23_s1 = inlined_call_operand.vmem [shape: f32[7,16], index: 1, kind: output, shape index: {}]  }
   0x1   :  { %v4_v0 = vld [vmem:[%s22_s0] ss:$0 sm:$0xff] }
   0x2   :  { %5 = vst [vmem:[%s23_s1] sm:$0xff] %v4_v0 }

// kernel: tile.34
= control target key start
LH: loop header
LB: loop body
LE: loop exit
PB: predicated region body
PF: predicated region fallthrough
CT: control target
= control target key end

     0   :  { %s59_s10 = smov 96   ;;  %s60_s11 = smov 64   ;;  %vm3_vm0 = vcmask 130048   ;;  %vm9_vm1 = vcmask 917248   ;;  %vm15_vm2 = vcmask 786048   ;;  %vm21_vm3 = vcmask 654848   ;;  %s99_s0 = inlined_call_operand.vmem [shape: f32[7,16], index: 0, kind: input, shape index: {}]   ;;  %s100_s1 = inlined_call_operand.vmem [shape: f32[1,112], index: 1, kind: output, shape index: {}]  }
   0x1   :  { %v47_v0 = vld [vmem:[%s99_s0 + $0x6] sm:$0x1]   ;;  %v49_v1 = vld [vmem:[%s99_s0 + $0x4] sm:$0x1]   ;;  %v51_v2 = vld [vmem:[%s99_s0 + $0x2] sm:$0x1]  }
   0x2   :  { %7 = vrot.lane.b32.xlu0 %v47_v0, %s59_s10  ;;  %19 = vrot.lane.b32.xlu1 %v49_v1, %s60_s11  ;;  %s61_s14 = smov 32   ;;  %v48_v3 = vld [vmem:[%s99_s0 + $0x5] sm:$0x1]   ;;  %v50_v4 = vld [vmem:[%s99_s0 + $0x3] sm:$0x1]   ;;  %s62_s21 = smov 80  }
   0x3   :  { %31 = vrot.lane.b32.xlu2 %v51_v2, %s61_s14  ;;  %v52_v5 = vld [vmem:[%s99_s0 + $0x1] sm:$0x1]   ;;  %s63_s22 = smov 48   ;;  %s64_s23 = smov 16   ;;  %v2_v6 = vld [vmem:[%s99_s0] sm:$0x1]  }
   0x4   :  { %4 = vst.msk [vmem:[#allocation0] sm:$0x1] %vm3_vm0, %v2_v6   ;;  %vm27_vm4 = vcmask 523648   ;;  %vm33_vm5 = vcmask 392448   ;;  %vm39_vm6 = vcmask 261248  }
   0xa   :  { %13 = vrot.lane.b32.xlu0 %v48_v3, %s62_s21  ;;  %25 = vrot.lane.b32.xlu1 %v50_v4, %s63_s22 }
   0xb   :  { %37 = vrot.lane.b32.xlu2 %v52_v5, %s64_s23 }
  0x5d   :  { %v32_v7 = vpop.permute.xlu2 %31  }
  0x65   :  { %v38_v8 = vpop.permute.xlu2 %37  }
  0x74   :  { %v8_v9 = vpop.permute.xlu0 %7   ;;  %v20_v10 = vpop.permute.xlu1 %19  }
  0x75   :  { %10 = vst.msk [vmem:[#allocation0] sm:$0x1] %vm9_vm1, %v8_v9  }
  0x7c   :  { %v14_v11 = vpop.permute.xlu0 %13   ;;  %v26_v12 = vpop.permute.xlu1 %25  }
  0x7d   :  { %16 = vst.msk [vmem:[#allocation0] sm:$0x1] %vm15_vm2, %v14_v11  }
  0x7e   :  { %22 = vst.msk [vmem:[#allocation0] sm:$0x1] %vm21_vm3, %v20_v10  }
  0x7f   :  { %28 = vst.msk [vmem:[#allocation0] sm:$0x1] %vm27_vm4, %v26_v12  }
  0x80   :  { %34 = vst.msk [vmem:[#allocation0] sm:$0x1] %vm33_vm5, %v32_v7  }
  0x81   :  { %40 = vst.msk [vmem:[#allocation0] sm:$0x1] %vm39_vm6, %v38_v8  }
  0x88   :  { %v43_v13 = vld [vmem:[#allocation0] sm:$0x1] }
  0x89   :  { %46 = vst [vmem:[%s100_s1] sm:$0x1] %v43_v13 }

// kernel: tile.48
= control target key start
LH: loop header
LB: loop body
LE: loop exit
PB: predicated region body
PF: predicated region fallthrough
CT: control target
= control target key end

     0   :  { %s22_s0 = inlined_call_operand.vmem [shape: f32[32], index: 0, kind: input, shape index: {}]   ;;  %s23_s1 = inlined_call_operand.vmem [shape: f32[3,32], index: 1, kind: output, shape index: {}]  }
   0x1   :  { %v4_v0 = vld [vmem:[%s22_s0] ss:$0 sm:$0xff] }
   0x2   :  { %5 = vst [vmem:[%s23_s1] sm:$0xf] %v4_v0 }

// kernel: tile.49
= control target key start
LH: loop header
LB: loop body
LE: loop exit
PB: predicated region body
PF: predicated region fallthrough
CT: control target
= control target key end

     0   :  { %s30_s8 = smov 32   ;;  %vm7_vm0 = vcmask 261120   ;;  %vm13_vm1 = vcmask 785920   ;;  %vm19_vm2 = vcmask 523520   ;;  %s47_s0 = inlined_call_operand.vmem [shape: f32[3,32], index: 0, kind: input, shape index: {}]   ;;  %s48_s1 = inlined_call_operand.vmem [shape: f32[1,96], index: 1, kind: output, shape index: {}]  }
   0x1   :  { %v4_v0 = vld [vmem:[%s47_s0] sm:$0xf]  ;;  %s29_s0 = smov 64  }
   0x2   :  { %5 = vst [vmem:[#allocation1] sm:$0xf] %v4_v0 }
   0x9   :  { %v10_v1 = vld [vmem:[#allocation1 + $0x2] sm:$0x1]   ;;  %v16_v2 = vld [vmem:[#allocation1 + $0x1] sm:$0x1]   ;;  %v6_v3 = vld [vmem:[#allocation1] sm:$0x1]  }
   0xa   :  { %11 = vrot.lane.b32.xlu0 %v10_v1, %s29_s0  ;;  %8 = vst.msk [vmem:[#allocation0] sm:$0x1] %vm7_vm0, %v6_v3  }
  0x12   :  { %17 = vrot.lane.b32.xlu0 %v16_v2, %s30_s8 }
  0x7c   :  { %v12_v4 = vpop.permute.xlu0 %11  }
  0x7d   :  { %14 = vst.msk [vmem:[#allocation0] sm:$0x1] %vm13_vm1, %v12_v4  }
  0x84   :  { %v18_v5 = vpop.permute.xlu0 %17  }
  0x85   :  { %20 = vst.msk [vmem:[#allocation0] sm:$0x1] %vm19_vm2, %v18_v5  }
  0x8c   :  { %v23_v6 = vld [vmem:[#allocation0] sm:$0x1] }
  0x8d   :  { %26 = vst [vmem:[%s48_s1] sm:$0x1] %v23_v6 }

// kernel: vae_encoder_forward.1
= control target key start
LH: loop header
LB: loop body
LE: loop exit
PB: predicated region body
PF: predicated region fallthrough
CT: control target
= control target key end

     0   :  { %21 = vsyncpa [#allocation5], 0  ;;  %vm81_vm0 = vcmask 1045504   ;;  %vm68_vm1 = vcmask 244736   ;;  %s1908_s0 = inlined_call_operand.vmem [shape: f32[60,30], index: 0, kind: input, shape index: {}]   ;;  %s1909_s1 = inlined_call_operand.vmem [shape: f32[3,30,112], index: 1, kind: input, shape index: {}]   ;;  %s1910_s2 = inlined_call_operand.vmem [shape: f32[1,112], index: 2, kind: input, shape index: {}]   ;;  %s1911_s3 = inlined_call_operand.vmem [shape: f32[3,128,112], index: 3, kind: input, shape index: {}]   ;;  %s1912_s4 = inlined_call_operand.vmem [shape: f32[1,112], index: 4, kind: input, shape index: {}]   ;;  %s1913_s5 = inlined_call_operand.vmem [shape: f32[1,112], index: 5, kind: input, shape index: {}]   ;;  %s1914_s6 = inlined_call_operand.vmem [shape: f32[1,112], index: 6, kind: input, shape index: {}]   ;;  %s1915_s7 = inlined_call_operand.vmem [shape: f32[3,112,96], index: 7, kind: input, shape index: {}]   ;;  %s1916_s8 = inlined_call_operand.vmem [shape: f32[1,96], index: 8, kind: input, shape index: {}]   ;;  %s1917_s9 = inlined_call_operand.vmem [shape: f32[3,96,128], index: 9, kind: input, shape index: {}]   ;;  %s1918_s10 = inlined_call_operand.vmem [shape: f32[1,128], index: 10, kind: input, shape index: {}]   ;;  %s1919_s11 = inlined_call_operand.vmem [shape: f32[128,16], index: 11, kind: input, shape index: {}]   ;;  %s1920_s12 = inlined_call_operand.vmem [shape: f32[1,16], index: 12, kind: input, shape index: {}]   ;;  %s1921_s13 = inlined_call_operand.vmem [shape: f32[2,8], index: 13, kind: input, shape index: {}]   ;;  %s1922_s14 = inlined_call_operand.hbm [shape: f32[2,8], index: 14, kind: output, shape index: {0}]   ;;  %s1923_s15 = inlined_call_operand.hbm [shape: f32[1,1], index: 15, kind: output, shape index: {1}]  }
   0x1   :  { %v990_v0 = vld [vmem:[%s1909_s1 + $0x58] sm:$0x3f]  ;;  %v989_v1 = vld [vmem:[%s1909_s1 + $0x50] sm:$0xff]  ;;  %v988_v5 = vld [vmem:[%s1909_s1 + $0x48] sm:$0xff] }
   0x2   :  { %v976_v2 = vld [vmem:[%s1909_s1 + $0x38] sm:$0x3f]  ;;  %991 = vmatpush.msk.msra.mxu2 %vm81_vm0, %v990_v0  ;;  %v975_v4 = vld [vmem:[%s1909_s1 + $0x30] sm:$0xff]  ;;  %v974_v7 = vld [vmem:[%s1909_s1 + $0x28] sm:$0xff] }
   0x3   :  { %977 = vmatpush.msk.msra.mxu0 %vm81_vm0, %v976_v2  ;;  %v58_v3 = vld [vmem:[%s1909_s1 + $0x18] sm:$0x3f]  ;;  %v57_v6 = vld [vmem:[%s1909_s1 + $0x10] sm:$0xff]  ;;  %v56_v8 = vld [vmem:[%s1909_s1 + $0x8] sm:$0xff] }
   0x4   :  { %982 = vmatpush.msk.msra.mxu1 %vm81_vm0, %v58_v3  ;;  %195 = vmatpush.msra.mxu2 %v989_v1  ;;  %v987_v9 = vld [vmem:[%s1909_s1 + $0x40] sm:$0xff]  ;;  %v1011_v15 = vld [vmem:[%s1911_s3 + $0xf8] sm:$0xff]  ;;  %v1010_v18 = vld [vmem:[%s1911_s3 + $0xf0] sm:$0xff] }
   0x5   :  { %98 = vmatpush.msra.mxu0 %v975_v4  ;;  %v973_v10 = vld [vmem:[%s1909_s1 + $0x20] sm:$0xff]  ;;  %v274_v16 = vld [vmem:[%s1911_s3 + $0x78] sm:$0xff]  ;;  %v273_v19 = vld [vmem:[%s1911_s3 + $0x70] sm:$0xff]  ;;  %294 = vmatpush.msra.mxu3 %v1011_v15 }
   0x6   :  { %142 = vmatpush.msra.mxu1 %v57_v6  ;;  %196 = vmatpush.msra.mxu2 %v988_v5  ;;  %v158_v11 = vld [vmem:[%s1908_s0 + $0x2] sm:$0xff]  ;;  %v1027_v17 = vld [vmem:[%s1911_s3 + $0x178] sm:$0xff]  ;;  %v1026_v20 = vld [vmem:[%s1911_s3 + $0x170] sm:$0xff] }
   0x7   :  { %99 = vmatpush.msra.mxu0 %v974_v7  ;;  %v55_v12 = vld [vmem:[%s1909_s1] sm:$0xff]  ;;  %v1009_v21 = vld [vmem:[%s1911_s3 + $0xe8] sm:$0xff]  ;;  %295 = vmatpush.msra.mxu3 %v1010_v18 }
   0x8   :  { %143 = vmatpush.msra.mxu1 %v56_v8  ;;  %v59_v13 = vld [vmem:[%s1908_s0 + $0x1e] sm:$0xff]  ;;  %197 = vmatpush.msra.mxu2 %v987_v9  ;;  %v272_v22 = vld [vmem:[%s1911_s3 + $0x68] sm:$0xff] }
   0x9   :  { %v51_v14 = vld [vmem:[%s1908_s0] sm:$0xff]  ;;  %100 = vmatpush.msra.mxu0 %v973_v10  ;;  %992 = vmatmul.msk.f32.vlgmr.msra.gmra.mxu2 %vm68_vm1, %v158_v11  ;;  %v1025_v23 = vld [vmem:[%s1911_s3 + $0x168] sm:$0xff] }
   0xa   :  { %144 = vmatpush.msra.mxu1 %v55_v12  ;;  %978 = vmatmul.msk.f32.vlgmr.msra.gmra.mxu0 %vm68_vm1, %v59_v13  ;;  %v159_v24 = vld [vmem:[%s1908_s0 + $0xa] sm:$0xff] }
   0xb   :  { %983 = vmatmul.msk.f32.vlgmr.msra.gmra.mxu1 %vm68_vm1, %v51_v14  ;;  %317 = vmatpush.msrb.mxu0 %v274_v16 }
   0xc   :  { %359 = vmatpush.msrb.mxu1 %v1027_v17 }
   0xd   :  { %318 = vmatpush.msrb.mxu0 %v273_v19 }
   0xe   :  { %360 = vmatpush.msrb.mxu1 %v1026_v20 }
   0xf   :  { %22 = vsyncpa [#allocation7], 0  ;;  %v60_v25 = vld [vmem:[%s1908_s0 + $0x26] sm:$0xff]  ;;  %296 = vmatpush.msra.mxu3 %v1009_v21  ;;  %319 = vmatpush.msrb.mxu0 %v272_v22  ;;  %v160_v27 = vld [vmem:[%s1908_s0 + $0x12] sm:$0xff]  ;;  %v1165_v42 = vmov 0.0   ;;  %vm239_vm3 = vcmask 910336  }
  0x10   :  { %v52_v26 = vld [vmem:[%s1908_s0 + $0x8] sm:$0xff]  ;;  %361 = vmatpush.msrb.mxu1 %v1025_v23  ;;  %v53_v29 = vld [vmem:[%s1908_s0 + $0x10] sm:$0xff]  ;;  %v161_v30 = vld [vmem:[%s1908_s0 + $0x1a] sm:$0xf]  ;;  %235 = vst [vmem:[#allocation2] sm:$0xff] %v1165_v42  ;;  %vm241_vm4 = vcmask 912386  }
  0x11   :  { %993 = vmatmul.msk.f32.gmra.mxu2 %vm68_vm1, %v159_v24  ;;  %v61_v28 = vld [vmem:[%s1908_s0 + $0x2e] sm:$0xff]  ;;  %v62_v31 = vld [vmem:[%s1908_s0 + $0x36] sm:$0xf]  ;;  %v1008_v33 = vld [vmem:[%s1911_s3 + $0xe0] sm:$0xff]  ;;  %237 = vst [vmem:[#allocation2 + $0x10] sm:$0xff] %v1165_v42  ;;  %vm243_vm5 = vcmask 914436  }
  0x12   :  { %979 = vmatmul.msk.f32.gmra.mxu0 %vm68_vm1, %v60_v25  ;;  %v54_v32 = vld [vmem:[%s1908_s0 + $0x18] sm:$0xf]  ;;  %v271_v34 = vld [vmem:[%s1911_s3 + $0x60] sm:$0xff]  ;;  %297 = vmatpush.msra.mxu3 %v1008_v33  ;;  %v1006_v39 = vld [vmem:[%s1911_s3 + $0xd0] sm:$0xff]  ;;  %236 = vst [vmem:[#allocation2 + $0x8] sm:$0xff] %v1165_v42  ;;  %vm245_vm6 = vcmask 916486  }
  0x13   :  { %984 = vmatmul.msk.f32.gmra.mxu1 %vm68_vm1, %v52_v26  ;;  %v1024_v35 = vld [vmem:[%s1911_s3 + $0x160] sm:$0xff]  ;;  %320 = vmatpush.msrb.mxu0 %v271_v34  ;;  %v1007_v36 = vld [vmem:[%s1911_s3 + $0xd8] sm:$0xff]  ;;  %v269_v40 = vld [vmem:[%s1911_s3 + $0x50] sm:$0xff]  ;;  %238 = vst [vmem:[#allocation2 + $0x18] sm:$0xff] %v1165_v42  ;;  %s1166_s17 = smov 80   ;;  %s1167_s18 = smov 96  }
  0x14   :  { %362 = vmatpush.msrb.mxu1 %v1024_v35  ;;  %v270_v37 = vld [vmem:[%s1911_s3 + $0x58] sm:$0xff]  ;;  %298 = vmatpush.msra.mxu3 %v1007_v36  ;;  %v1022_v41 = vld [vmem:[%s1911_s3 + $0x150] sm:$0xff]  ;;  %v1005_v43 = vld [vmem:[%s1911_s3 + $0xc8] sm:$0xff]  ;;  %s1168_s19 = smov 112   ;;  %s1169_s20 = smov 48   ;;  %vm440_vm10 = vcmask 130048  }
  0x15   :  { %v1023_v38 = vld [vmem:[%s1911_s3 + $0x158] sm:$0xff]  ;;  %321 = vmatpush.msrb.mxu0 %v270_v37  ;;  %v268_v44 = vld [vmem:[%s1911_s3 + $0x48] sm:$0xff]  ;;  %v1004_v46 = vld [vmem:[%s1911_s3 + $0xc0] sm:$0xff]  ;;  %s1171_s1 = smov 32   ;;  %vm442_vm11 = vcmask 128000   ;;  %s1173_s21 = smov 16  }
  0x16   :  { %363 = vmatpush.msrb.mxu1 %v1023_v38  ;;  %299 = vmatpush.msra.mxu3 %v1006_v39  ;;  %v1021_v45 = vld [vmem:[%s1911_s3 + $0x148] sm:$0xff]  ;;  %v267_v47 = vld [vmem:[%s1911_s3 + $0x40] sm:$0xff]  ;;  %v1003_v49 = vld [vmem:[%s1911_s3 + $0xb8] sm:$0xff]  ;;  %vm479_vm13 = vcmask 261120   ;;  %vm481_vm14 = vcmask 392192   ;;  %vm483_vm15 = vcmask 523264  }
  0x17   :  { %322 = vmatpush.msrb.mxu0 %v269_v40  ;;  %v1020_v48 = vld [vmem:[%s1911_s3 + $0x140] sm:$0xff]  ;;  %v266_v50 = vld [vmem:[%s1911_s3 + $0x38] sm:$0xff]  ;;  %v1002_v52 = vld [vmem:[%s1911_s3 + $0xb0] sm:$0xff]  ;;  %vm485_vm0 = vcmask 654336   ;;  %s1174_s22 = smov 8   ;;  %s948_s27 = sshll.u32 %s1922_s14, 4  ;;  %s949_s27 = int_to_ptr.hbm [resolvable:$true] %s948_s27 }
  0x18   :  { %364 = vmatpush.msrb.mxu1 %v1022_v41  ;;  %300 = vmatpush.msra.mxu3 %v1005_v43  ;;  %v1019_v51 = vld [vmem:[%s1911_s3 + $0x138] sm:$0xff]  ;;  %v265_v53 = vld [vmem:[%s1911_s3 + $0x30] sm:$0xff]  ;;  %v1001_v55 = vld [vmem:[%s1911_s3 + $0xa8] sm:$0xff]  ;;  %s959_s29 = sshll.u32 %s1923_s15, 4  ;;  %s960_s29 = int_to_ptr.hbm [resolvable:$true] %s959_s29 }
  0x19   :  { %994 = vmatmul.msk.f32.gmra.mxu2 %vm68_vm1, %v160_v27  ;;  %323 = vmatpush.msrb.mxu0 %v268_v44  ;;  %v1018_v54 = vld [vmem:[%s1911_s3 + $0x130] sm:$0xff]  ;;  %v264_v56 = vld [vmem:[%s1911_s3 + $0x28] sm:$0xff]  ;;  %v1000_v58 = vld [vmem:[%s1911_s3 + $0xa0] sm:$0xff] }
  0x1a   :  { %980 = vmatmul.msk.f32.gmra.mxu0 %vm68_vm1, %v61_v28  ;;  %365 = vmatpush.msrb.mxu1 %v1021_v45  ;;  %v1017_v57 = vld [vmem:[%s1911_s3 + $0x128] sm:$0xff]  ;;  %v263_v59 = vld [vmem:[%s1911_s3 + $0x20] sm:$0xff]  ;;  %v999_v61 = vld [vmem:[%s1911_s3 + $0x98] sm:$0xff] }
  0x1b   :  { %985 = vmatmul.msk.f32.gmra.mxu1 %vm68_vm1, %v53_v29  ;;  %301 = vmatpush.msra.mxu3 %v1004_v46  ;;  %v1016_v60 = vld [vmem:[%s1911_s3 + $0x120] sm:$0xff]  ;;  %v262_v62 = vld [vmem:[%s1911_s3 + $0x18] sm:$0xff]  ;;  %v998_v0 = vld [vmem:[%s1911_s3 + $0x90] sm:$0xff] }
  0x1c   :  { %324 = vmatpush.msrb.mxu0 %v267_v47  ;;  %366 = vmatpush.msrb.mxu1 %v1020_v48  ;;  %v1015_v63 = vld [vmem:[%s1911_s3 + $0x118] sm:$0xff]  ;;  %v261_v1 = vld [vmem:[%s1911_s3 + $0x10] sm:$0xff]  ;;  %v997_v3 = vld [vmem:[%s1911_s3 + $0x88] sm:$0xff] }
  0x1d   :  { %302 = vmatpush.msra.mxu3 %v1003_v49  ;;  %v1014_v2 = vld [vmem:[%s1911_s3 + $0x110] sm:$0xff]  ;;  %v260_v4 = vld [vmem:[%s1911_s3 + $0x8] sm:$0xff]  ;;  %v996_v6 = vld [vmem:[%s1911_s3 + $0x80] sm:$0xff] }
  0x1e   :  { %325 = vmatpush.msrb.mxu0 %v266_v50  ;;  %367 = vmatpush.msrb.mxu1 %v1019_v51  ;;  %v1013_v5 = vld [vmem:[%s1911_s3 + $0x108] sm:$0xff]  ;;  %v259_v7 = vld [vmem:[%s1911_s3] sm:$0xff] }
  0x1f   :  { %303 = vmatpush.msra.mxu3 %v1002_v52  ;;  %v1012_v8 = vld [vmem:[%s1911_s3 + $0x100] sm:$0xff] }
  0x20   :  { %326 = vmatpush.msrb.mxu0 %v265_v53  ;;  %368 = vmatpush.msrb.mxu1 %v1018_v54  ;;  %v1100_v12 = vld [vmem:[%s1910_s2] ss:$0 sm:$0xff] }
  0x21   :  { %995 = vmatmul.msk.f32.gmra.mxu2 %vm68_vm1, %v161_v30  ;;  %304 = vmatpush.msra.mxu3 %v1001_v55  ;;  %v1101_v51 = vld [vmem:[%s1912_s4] ss:$0 sm:$0xff]  ;;  %s1170_s4 = smov 64  }
  0x22   :  { %981 = vmatmul.msk.f32.gmra.mxu0 %vm68_vm1, %v62_v31  ;;  %369 = vmatpush.msrb.mxu1 %v1017_v57 }
  0x23   :  { %986 = vmatmul.msk.f32.gmra.mxu1 %vm68_vm1, %v54_v32  ;;  %327 = vmatpush.msrb.mxu0 %v264_v56  ;;  %vm487_vm1 = vcmask 785408  }
  0x24   :  { %305 = vmatpush.msra.mxu3 %v1000_v58  ;;  %370 = vmatpush.msrb.mxu1 %v1016_v60 }
  0x25   :  { %328 = vmatpush.msrb.mxu0 %v263_v59 }
  0x26   :  { %306 = vmatpush.msra.mxu3 %v999_v61  ;;  %371 = vmatpush.msrb.mxu1 %v1015_v63 }
  0x27   :  { %329 = vmatpush.msrb.mxu0 %v262_v62 }
  0x28   :  { %307 = vmatpush.msra.mxu3 %v998_v0  ;;  %372 = vmatpush.msrb.mxu1 %v1014_v2 }
  0x29   :  { %330 = vmatpush.msrb.mxu0 %v261_v1 }
  0x2a   :  { %308 = vmatpush.msra.mxu3 %v997_v3  ;;  %373 = vmatpush.msrb.mxu1 %v1013_v5 }
  0x2b   :  { %331 = vmatpush.msrb.mxu0 %v260_v4 }
  0x2c   :  { %309 = vmatpush.msra.mxu3 %v996_v6  ;;  %374 = vmatpush.msrb.mxu1 %v1012_v8 }
  0x2d   :  { %332 = vmatpush.msrb.mxu0 %v259_v7 }
  0x87   :  { %v102_v9 = vpop.f32.mrf.mxu0 }
  0x88   :  { %v146_v10 = vpop.f32.mrf.mxu1 }
  0x89   :  { %v147_v11 = vadd.f32 %v146_v10, %v102_v9  ;;  %v1172_v9 = vmov 98.0  }
  0x8a   :  { %1107 = vrcp.f32 %v1172_v9 }
  0x8c   :  { %v199_v13 = vpop.f32.mrf.mxu2 }
  0x8d   :  { %v211_v14 = vadd.f32 %v199_v13, %v147_v11 }
  0x8f   :  { %v219_v15 = vadd.f32 %v1100_v12, %v211_v14  ;;  %v105_v16 = vpop.f32.mrf.mxu0 }
  0x90   :  { %v149_v17 = vpop.f32.mrf.mxu1 }
  0x91   :  { %vm223_vm2 = vcmp.gt.f32.partialorder %v219_v15, 0.0  ;;  %v227_v18 = vmul.f32 0.01, %v219_v15  ;;  %v150_v19 = vadd.f32 %v149_v17, %v105_v16  ;;  %v1108_v16 = vpop.eup %1107 }
  0x92   :  { %vm456_vm12 = vweird.f32 %v1108_v16 }
  0x93   :  { %v231_v20 = vsel %vm223_vm2, %v219_v15, %v227_v18 }
  0x94   :  { %240 = vst.msk [vmem:[#allocation2 + $0x10] sm:$0x3] %vm239_vm3, %v231_v20  ;;  %v202_v21 = vpop.f32.mrf.mxu2 }
  0x95   :  { %242 = vst.msk [vmem:[#allocation2] sm:$0xc] %vm241_vm4, %v231_v20  ;;  %v212_v22 = vadd.f32 %v202_v21, %v150_v19  ;;  %v452_v21 = vmul.f32 98.0, %v1108_v16 }
  0x96   :  { %244 = vst.msk [vmem:[#allocation2 + $0xe] sm:$0x30] %vm243_vm5, %v231_v20 }
  0x97   :  { %246 = vst.msk [vmem:[#allocation2 - $0x2] sm:$0xc0] %vm245_vm6, %v231_v20  ;;  %v220_v23 = vadd.f32 %v1100_v12, %v212_v22  ;;  %v108_v24 = vpop.f32.mrf.mxu0 }
  0x98   :  { %v152_v25 = vpop.f32.mrf.mxu1 }
  0x99   :  { %vm224_vm7 = vcmp.gt.f32.partialorder %v220_v23, 0.0  ;;  %v228_v26 = vmul.f32 0.01, %v220_v23  ;;  %v153_v27 = vadd.f32 %v152_v25, %v108_v24  ;;  %v453_v24 = vsub.f32 1.0, %v452_v21 }
  0x9b   :  { %v232_v28 = vsel %vm224_vm7, %v220_v23, %v228_v26 }
  0x9c   :  { %247 = vst.msk [vmem:[#allocation2 + $0x14] sm:$0x3] %vm239_vm3, %v232_v28  ;;  %v205_v29 = vpop.f32.mrf.mxu2 }
  0x9d   :  { %248 = vst.msk [vmem:[#allocation2 + $0x4] sm:$0xc] %vm241_vm4, %v232_v28  ;;  %v213_v30 = vadd.f32 %v205_v29, %v153_v27  ;;  %v454_v29 = vmul.f32 %v1108_v16, %v453_v24 }
  0x9e   :  { %249 = vst.msk [vmem:[#allocation2 + $0x12] sm:$0x30] %vm243_vm5, %v232_v28 }
  0x9f   :  { %250 = vst.msk [vmem:[#allocation2 + $0x2] sm:$0xc0] %vm245_vm6, %v232_v28  ;;  %v221_v31 = vadd.f32 %v1100_v12, %v213_v30  ;;  %v111_v32 = vpop.f32.mrf.mxu0 }
  0xa0   :  { %v155_v33 = vpop.f32.mrf.mxu1 }
  0xa1   :  { %vm225_vm8 = vcmp.gt.f32.partialorder %v221_v31, 0.0  ;;  %v229_v34 = vmul.f32 0.01, %v221_v31  ;;  %v156_v35 = vadd.f32 %v155_v33, %v111_v32  ;;  %v455_v32 = vadd.f32 %v1108_v16, %v454_v29  ;;  %v1040_v29 = vld [vmem:[%s1915_s7 + $0xd0] sm:$0xff] }
  0xa3   :  { %v233_v36 = vsel %vm225_vm8, %v221_v31, %v229_v34 }
  0xa4   :  { %251 = vst.msk [vmem:[#allocation2 + $0x18] sm:$0x3] %vm239_vm3, %v233_v36  ;;  %v208_v37 = vpop.f32.mrf.mxu2  ;;  %v257_v38 = vld [vmem:[#allocation2] sm:$0xff] }
  0xa5   :  { %252 = vst.msk [vmem:[#allocation2 + $0x8] sm:$0xc] %vm241_vm4, %v233_v36  ;;  %v214_v39 = vadd.f32 %v208_v37, %v156_v35  ;;  %v275_v40 = vld [vmem:[#allocation2 + $0x10] sm:$0xff]  ;;  %333 = vmatmul.f32.vlgmr.msrb.gmra.mxu0 %v257_v38  ;;  %v1538_v35 = vsel %vm456_vm12, %v1108_v16, %v455_v32  ;;  %vm939_vm12 = vcmask 0  }
  0xa6   :  { %253 = vst.msk [vmem:[#allocation2 + $0x16] sm:$0x30] %vm243_vm5, %v233_v36  ;;  %310 = vmatmul.f32.vlgmr.msra.gmra.mxu3 %v275_v40  ;;  %v340_v41 = vld [vmem:[#allocation2 + $0x2] sm:$0xff] }
  0xa7   :  { %254 = vst.msk [vmem:[#allocation2 + $0x6] sm:$0xc0] %vm245_vm6, %v233_v36  ;;  %v222_v42 = vadd.f32 %v1100_v12, %v214_v39  ;;  %375 = vmatmul.f32.vlgmr.msrb.gmra.mxu1 %v340_v41 }
  0xa9   :  { %vm226_vm9 = vcmp.gt.f32.partialorder %v222_v42, 0.0  ;;  %v230_v43 = vmul.f32 0.01, %v222_v42 }
  0xab   :  { %v234_v44 = vsel %vm226_vm9, %v222_v42, %v230_v43 }
  0xac   :  { %255 = vst.msk [vmem:[#allocation2 + $0x1c] sm:$0x3] %vm239_vm3, %v234_v44 }
  0xad   :  { %256 = vst.msk [vmem:[#allocation2 + $0xc] sm:$0xc] %vm241_vm4, %v234_v44 }
  0xae   :  { %v258_v45 = vld [vmem:[#allocation2 + $0x8] sm:$0x3f] }
  0xaf   :  { %336 = vmatmul.f32.gmra.mxu0 %v258_v45 }
  0xb3   :  { %v276_v46 = vld [vmem:[#allocation2 + $0x18] sm:$0x3f] }
  0xb4   :  { %313 = vmatmul.f32.gmra.mxu3 %v276_v46  ;;  %v341_v47 = vld [vmem:[#allocation2 + $0xa] sm:$0x3f] }
  0xb5   :  { %378 = vmatmul.f32.gmra.mxu1 %v341_v47 }
 0x122   :  { %v334_v48 = vpop.f32.mrf.mxu0 }
 0x124   :  { %v376_v52 = vpop.f32.mrf.mxu1 }
 0x129   :  { %v311_v49 = vpop.f32.mrf.mxu3 }
 0x12a   :  { %v335_v50 = vadd.f32 %v334_v48, %v311_v49 }
 0x12c   :  { %v382_v53 = vadd.f32 %v376_v52, %v335_v50  ;;  %v337_v55 = vpop.f32.mrf.mxu0 }
 0x12e   :  { %v1506_v54 = vadd.f32 %v1101_v51, %v382_v53 }
 0x130   :  { %408 = vrot.lane.b32.xlu2 %v1506_v54, %s1166_s17  ;;  %400 = vrot.lane.b32.xlu1 %v1506_v54, %s1167_s18 }
 0x131   :  { %392 = vrot.lane.b32.xlu0 %v1506_v54, %s1168_s19 }
 0x132   :  { %v379_v58 = vpop.f32.mrf.mxu1 }
 0x137   :  { %v314_v56 = vpop.f32.mrf.mxu3 }
 0x138   :  { %424 = vrot.lane.b32.xlu2 %v1506_v54, %s1169_s20  ;;  %v338_v57 = vadd.f32 %v337_v55, %v314_v56 }
 0x139   :  { %416 = vrot.lane.b32.xlu0 %v1506_v54, %s1170_s4 }
 0x13a   :  { %v383_v59 = vadd.f32 %v379_v58, %v338_v57 }
 0x13c   :  { %v1518_v60 = vadd.f32 %v1101_v51, %v383_v59 }
 0x13e   :  { %402 = vrot.lane.b32.xlu1 %v1518_v60, %s1167_s18 }
 0x140   :  { %410 = vrot.lane.b32.xlu2 %v1518_v60, %s1166_s17 }
 0x141   :  { %394 = vrot.lane.b32.xlu0 %v1518_v60, %s1168_s19 }
 0x146   :  { %418 = vrot.lane.b32.xlu1 %v1518_v60, %s1170_s4 }
 0x148   :  { %434 = vrot.lane.b32.xlu2 %v1518_v60, %s1171_s1 }
 0x149   :  { %426 = vrot.lane.b32.xlu0 %v1518_v60, %s1169_s20 }
 0x14e   :  { %432 = vrot.lane.b32.xlu1 %v1506_v54, %s1171_s1 }
 0x18a   :  { %v409_v61 = vpop.permute.xlu2 %408 }
 0x192   :  { %v425_v0 = vpop.permute.xlu2 %424 }
 0x19a   :  { %v411_v5 = vpop.permute.xlu2 %410 }
 0x1a2   :  { %v401_v63 = vpop.permute.xlu1 %400  ;;  %v435_v18 = vpop.permute.xlu2 %434 }
 0x1a3   :  { %v393_v62 = vpop.permute.xlu0 %392 }
 0x1a4   :  { %v398_v3 = vadd.f32 %v393_v62, %v1506_v54 }
 0x1a6   :  { %v406_v7 = vadd.f32 %v401_v63, %v398_v3 }
 0x1a8   :  { %v414_v12 = vadd.f32 %v409_v61, %v406_v7 }
 0x1ab   :  { %v417_v1 = vpop.permute.xlu0 %416 }
 0x1ac   :  { %v422_v14 = vadd.f32 %v417_v1, %v414_v12 }
 0x1ae   :  { %v430_v20 = vadd.f32 %v425_v0, %v422_v14 }
 0x1b0   :  { %v403_v2 = vpop.permute.xlu1 %402 }
 0x1b3   :  { %v395_v4 = vpop.permute.xlu0 %394 }
 0x1b4   :  { %v399_v6 = vadd.f32 %v395_v4, %v1518_v60 }
 0x1b6   :  { %v407_v8 = vadd.f32 %v403_v2, %v399_v6 }
 0x1b8   :  { %v419_v10 = vpop.permute.xlu1 %418  ;;  %v415_v11 = vadd.f32 %v411_v5, %v407_v8 }
 0x1ba   :  { %v423_v13 = vadd.f32 %v419_v10, %v415_v11 }
 0x1bb   :  { %v427_v15 = vpop.permute.xlu0 %426 }
 0x1bc   :  { %v431_v17 = vadd.f32 %v427_v15, %v423_v13 }
 0x1be   :  { %v439_v19 = vadd.f32 %v435_v18, %v431_v17 }
 0x1c0   :  { %v433_v22 = vpop.permute.xlu1 %432  ;;  %v443_v26 = vsel %vm442_vm11, %v439_v19, 0.0 }
 0x1c1   :  { %v438_v23 = vadd.f32 %v433_v22, %v430_v20 }
 0x1c3   :  { %v441_v25 = vsel %vm440_vm10, %v438_v23, 0.0 }
 0x1c4   :  { %v444_v27 = vadd.f32 %v443_v26, %v441_v25  ;;  %v1041_v25 = vld [vmem:[%s1915_s7 + $0xd8] sm:$0xff]  ;;  %v632_v26 = vld [vmem:[%s1915_s7 + $0x68] sm:$0xff] }
 0x1c5   :  { %655 = vmatpush.msrb.mxu2 %v1041_v25  ;;  %678 = vmatpush.msrb.mxu3 %v632_v26  ;;  %v1068_v25 = vld [vmem:[%s1917_s9 + $0xa8] sm:$0xff]  ;;  %v1084_v26 = vld [vmem:[%s1917_s9 + $0x118] sm:$0xff] }
 0x1c6   :  { %v445_v28 = vrot.slane %v444_v27, 4 }
 0x1c7   :  { %656 = vmatpush.msrb.mxu2 %v1040_v29  ;;  %v1067_v29 = vld [vmem:[%s1917_s9 + $0xa0] sm:$0xff] }
 0x1c8   :  { %v446_v30 = vadd.f32 %v445_v28, %v444_v27  ;;  %v1057_v27 = vld [vmem:[%s1915_s7 + $0x148] sm:$0xff] }
 0x1c9   :  { %717 = vmatpush.msra.mxu0 %v1057_v27  ;;  %v1083_v27 = vld [vmem:[%s1917_s9 + $0x110] sm:$0xff] }
 0x1ca   :  { %v447_v31 = vrot.slane %v446_v30, 2 }
 0x1cc   :  { %v448_v33 = vadd.f32 %v447_v31, %v446_v30  ;;  %v631_v30 = vld [vmem:[%s1915_s7 + $0x60] sm:$0xff] }
 0x1cd   :  { %v1056_v31 = vld [vmem:[%s1915_s7 + $0x140] sm:$0xff]  ;;  %679 = vmatpush.msrb.mxu3 %v631_v30  ;;  %v1082_v30 = vld [vmem:[%s1917_s9 + $0x108] sm:$0xff] }
 0x1ce   :  { %v449_v34 = vrot.slane %v448_v33, 1  ;;  %718 = vmatpush.msra.mxu0 %v1056_v31 }
 0x1d0   :  { %v450_v36 = vadd.f32 %v449_v34, %v448_v33  ;;  %v1039_v34 = vld [vmem:[%s1915_s7 + $0xc8] sm:$0xff] }
 0x1d1   :  { %657 = vmatpush.msrb.mxu2 %v1039_v34 }
 0x1d2   :  { %v458_v37 = vmul.f32 %v1538_v35, %v450_v36  ;;  %v1055_v36 = vld [vmem:[%s1915_s7 + $0x138] sm:$0xff] }
 0x1d3   :  { %719 = vmatpush.msra.mxu0 %v1055_v36  ;;  %v1103_v36 = vld [vmem:[%s1914_s6] ss:$0 sm:$0xff] }
 0x1d4   :  { %466 = vrot.lane.b32.xlu2 %v458_v37, %s1169_s20  ;;  %463 = vrot.lane.b32.xlu1 %v458_v37, %s1171_s1 }
 0x1d5   :  { %460 = vrot.lane.b32.xlu0 %v458_v37, %s1173_s21 }
 0x1dc   :  { %475 = vrot.lane.b32.xlu2 %v458_v37, %s1167_s18  ;;  %472 = vrot.lane.b32.xlu1 %v458_v37, %s1166_s17 }
 0x1dd   :  { %469 = vrot.lane.b32.xlu0 %v458_v37, %s1170_s4 }
 0x22e   :  { %v467_v39 = vpop.permute.xlu2 %466 }
 0x236   :  { %v476_v47 = vpop.permute.xlu2 %475 }
 0x246   :  { %v464_v38 = vpop.permute.xlu1 %463 }
 0x247   :  { %v461_v40 = vpop.permute.xlu0 %460 }
 0x248   :  { %v478_v41 = vsel %vm440_vm10, %v458_v37, %v461_v40  ;;  %v1054_v40 = vld [vmem:[%s1915_s7 + $0x130] sm:$0xff] }
 0x249   :  { %v480_v42 = vsel %vm479_vm13, %v478_v41, %v464_v38  ;;  %v1038_v38 = vld [vmem:[%s1915_s7 + $0xc0] sm:$0xff]  ;;  %720 = vmatpush.msra.mxu0 %v1054_v40 }
 0x24a   :  { %v482_v44 = vsel %vm481_vm14, %v480_v42, %v467_v39  ;;  %v629_v39 = vld [vmem:[%s1915_s7 + $0x50] sm:$0xff]  ;;  %658 = vmatpush.msrb.mxu2 %v1038_v38  ;;  %v1037_v42 = vld [vmem:[%s1915_s7 + $0xb8] sm:$0xff] }
 0x24c   :  { %659 = vmatpush.msrb.mxu2 %v1037_v42  ;;  %v1063_v42 = vld [vmem:[%s1917_s9 + $0x80] sm:$0xff] }
 0x24e   :  { %v473_v43 = vpop.permute.xlu1 %472 }
 0x24f   :  { %v470_v45 = vpop.permute.xlu0 %469 }
 0x250   :  { %v484_v46 = vsel %vm483_vm15, %v482_v44, %v470_v45  ;;  %v1053_v44 = vld [vmem:[%s1915_s7 + $0x128] sm:$0xff] }
 0x251   :  { %v486_v48 = vsel %vm485_vm0, %v484_v46, %v473_v43  ;;  %v628_v43 = vld [vmem:[%s1915_s7 + $0x48] sm:$0xff]  ;;  %v1036_v46 = vld [vmem:[%s1915_s7 + $0xb0] sm:$0xff]  ;;  %721 = vmatpush.msra.mxu0 %v1053_v44 }
 0x252   :  { %v488_v49 = vsel %vm487_vm1, %v486_v48, %v476_v47  ;;  %v627_v47 = vld [vmem:[%s1915_s7 + $0x40] sm:$0xff]  ;;  %660 = vmatpush.msrb.mxu2 %v1036_v46  ;;  %v1061_v46 = vld [vmem:[%s1917_s9 + $0x70] sm:$0xff] }
 0x253   :  { %v489_v50 = vperm.slane %v488_v49, 0  ;;  %v1052_v48 = vld [vmem:[%s1915_s7 + $0x120] sm:$0xff] }
 0x254   :  { %722 = vmatpush.msra.mxu0 %v1052_v48 }
 0x255   :  { %v1554_v51 = vsub.f32 %v1506_v54, %v489_v50  ;;  %v1557_v52 = vsub.f32 %v1518_v60, %v489_v50 }
 0x257   :  { %v492_v53 = vmul.f32 %v1554_v51, %v1554_v51  ;;  %v493_v55 = vmul.f32 %v1557_v52, %v1557_v52 }
 0x259   :  { %498 = vrot.lane.b32.xlu1 %v493_v55, %s1168_s19  ;;  %504 = vrot.lane.b32.xlu2 %v492_v53, %s1167_s18 }
 0x25a   :  { %496 = vrot.lane.b32.xlu0 %v492_v53, %s1168_s19 }
 0x261   :  { %512 = vrot.lane.b32.xlu1 %v492_v53, %s1166_s17  ;;  %514 = vrot.lane.b32.xlu2 %v493_v55, %s1166_s17 }
 0x262   :  { %506 = vrot.lane.b32.xlu0 %v493_v55, %s1167_s18 }
 0x269   :  { %522 = vrot.lane.b32.xlu1 %v493_v55, %s1170_s4  ;;  %528 = vrot.lane.b32.xlu2 %v492_v53, %s1169_s20 }
 0x26a   :  { %520 = vrot.lane.b32.xlu0 %v492_v53, %s1170_s4 }
 0x271   :  { %536 = vrot.lane.b32.xlu1 %v492_v53, %s1171_s1  ;;  %538 = vrot.lane.b32.xlu2 %v493_v55, %s1171_s1 }
 0x272   :  { %530 = vrot.lane.b32.xlu0 %v493_v55, %s1169_s20 }
 0x2b3   :  { %v505_v54 = vpop.permute.xlu2 %504 }
 0x2bb   :  { %v515_v58 = vpop.permute.xlu2 %514 }
 0x2c3   :  { %v529_v1 = vpop.permute.xlu2 %528 }
 0x2cb   :  { %v499_v56 = vpop.permute.xlu1 %498  ;;  %v539_v13 = vpop.permute.xlu2 %538 }
 0x2cc   :  { %v497_v57 = vpop.permute.xlu0 %496  ;;  %v503_v62 = vadd.f32 %v499_v56, %v493_v55  ;;  %v1035_v55 = vld [vmem:[%s1915_s7 + $0xa8] sm:$0xff]  ;;  %v1051_v56 = vld [vmem:[%s1915_s7 + $0x118] sm:$0xff] }
 0x2cd   :  { %v502_v61 = vadd.f32 %v497_v57, %v492_v53  ;;  %661 = vmatpush.msrb.mxu2 %v1035_v55  ;;  %723 = vmatpush.msra.mxu0 %v1051_v56  ;;  %v1060_v55 = vld [vmem:[%s1917_s9 + $0x68] sm:$0xff]  ;;  %v1059_v56 = vld [vmem:[%s1917_s9 + $0x60] sm:$0xff] }
 0x2cf   :  { %v510_v63 = vadd.f32 %v505_v54, %v502_v61  ;;  %v626_v54 = vld [vmem:[%s1915_s7 + $0x38] sm:$0xff]  ;;  %v625_v61 = vld [vmem:[%s1915_s7 + $0x30] sm:$0xff] }
 0x2d3   :  { %v513_v59 = vpop.permute.xlu1 %512 }
 0x2d4   :  { %v507_v60 = vpop.permute.xlu0 %506  ;;  %v518_v3 = vadd.f32 %v513_v59, %v510_v63 }
 0x2d5   :  { %v511_v4 = vadd.f32 %v507_v60, %v503_v62  ;;  %v1034_v60 = vld [vmem:[%s1915_s7 + $0xa0] sm:$0xff]  ;;  %v1050_v62 = vld [vmem:[%s1915_s7 + $0x110] sm:$0xff] }
 0x2d6   :  { %662 = vmatpush.msrb.mxu2 %v1034_v60  ;;  %724 = vmatpush.msra.mxu0 %v1050_v62  ;;  %v1079_v60 = vld [vmem:[%s1917_s9 + $0xf0] sm:$0xff]  ;;  %v1078_v62 = vld [vmem:[%s1917_s9 + $0xe8] sm:$0xff] }
 0x2d7   :  { %v519_v6 = vadd.f32 %v515_v58, %v511_v4  ;;  %v623_v4 = vld [vmem:[%s1915_s7 + $0x20] sm:$0xff] }
 0x2db   :  { %v523_v0 = vpop.permute.xlu1 %522 }
 0x2dc   :  { %v521_v2 = vpop.permute.xlu0 %520  ;;  %v527_v7 = vadd.f32 %v523_v0, %v519_v6  ;;  %v1033_v0 = vld [vmem:[%s1915_s7 + $0x98] sm:$0xff]  ;;  %v1031_v6 = vld [vmem:[%s1915_s7 + $0x88] sm:$0xff] }
 0x2dd   :  { %v526_v5 = vadd.f32 %v521_v2, %v518_v3  ;;  %v1049_v2 = vld [vmem:[%s1915_s7 + $0x108] sm:$0xff]  ;;  %663 = vmatpush.msrb.mxu2 %v1033_v0  ;;  %v1032_v3 = vld [vmem:[%s1915_s7 + $0x90] sm:$0xff]  ;;  %v1077_v0 = vld [vmem:[%s1917_s9 + $0xe0] sm:$0xff] }
 0x2de   :  { %725 = vmatpush.msra.mxu0 %v1049_v2  ;;  %v1076_v2 = vld [vmem:[%s1917_s9 + $0xd8] sm:$0xff] }
 0x2df   :  { %v534_v9 = vadd.f32 %v529_v1, %v526_v5  ;;  %v624_v1 = vld [vmem:[%s1915_s7 + $0x28] sm:$0xff]  ;;  %v1048_v5 = vld [vmem:[%s1915_s7 + $0x100] sm:$0xff]  ;;  %664 = vmatpush.msrb.mxu2 %v1032_v3  ;;  %v750_v3 = vld [vmem:[%s1917_s9 + $0x30] sm:$0xff] }
 0x2e0   :  { %726 = vmatpush.msra.mxu0 %v1048_v5  ;;  %v749_v5 = vld [vmem:[%s1917_s9 + $0x28] sm:$0xff] }
 0x2e1   :  { %665 = vmatpush.msrb.mxu2 %v1031_v6  ;;  %v1074_v6 = vld [vmem:[%s1917_s9 + $0xc8] sm:$0xff] }
 0x2e3   :  { %v537_v8 = vpop.permute.xlu1 %536 }
 0x2e4   :  { %v531_v10 = vpop.permute.xlu0 %530  ;;  %v542_v11 = vadd.f32 %v537_v8, %v534_v9  ;;  %v1047_v8 = vld [vmem:[%s1915_s7 + $0xf8] sm:$0xff]  ;;  %v1030_v9 = vld [vmem:[%s1915_s7 + $0x80] sm:$0xff] }
 0x2e5   :  { %v535_v12 = vadd.f32 %v531_v10, %v527_v7  ;;  %v622_v7 = vld [vmem:[%s1915_s7 + $0x18] sm:$0xff]  ;;  %v621_v10 = vld [vmem:[%s1915_s7 + $0x10] sm:$0xff]  ;;  %727 = vmatpush.msra.mxu0 %v1047_v8  ;;  %666 = vmatpush.msrb.mxu2 %v1030_v9  ;;  %v1073_v8 = vld [vmem:[%s1917_s9 + $0xc0] sm:$0xff] }
 0x2e6   :  { %v544_v15 = vsel %vm440_vm10, %v542_v11, 0.0  ;;  %v1046_v11 = vld [vmem:[%s1915_s7 + $0xf0] sm:$0xff]  ;;  %v747_v9 = vld [vmem:[%s1917_s9 + $0x18] sm:$0xff] }
 0x2e7   :  { %v543_v14 = vadd.f32 %v539_v13, %v535_v12  ;;  %v1029_v12 = vld [vmem:[%s1915_s7 + $0x78] sm:$0xff]  ;;  %v620_v13 = vld [vmem:[%s1915_s7 + $0x8] sm:$0xff]  ;;  %728 = vmatpush.msra.mxu0 %v1046_v11 }
 0x2e8   :  { %667 = vmatpush.msrb.mxu2 %v1029_v12  ;;  %v745_v11 = vld [vmem:[%s1917_s9 + $0x8] sm:$0xff]  ;;  %v744_v12 = vld [vmem:[%s1917_s9] sm:$0xff] }
 0x2e9   :  { %v545_v16 = vsel %vm442_vm11, %v543_v14, 0.0  ;;  %vm649_vm11 = vcmask 916480  }
 0x2ea   :  { %v546_v17 = vadd.f32 %v545_v16, %v544_v15  ;;  %v1045_v15 = vld [vmem:[%s1915_s7 + $0xe8] sm:$0xff] }
 0x2eb   :  { %729 = vmatpush.msra.mxu0 %v1045_v15  ;;  %v873_v15 = vld [vmem:[%s1919_s11 + $0x68] sm:$0xff] }
 0x2ec   :  { %v547_v18 = vrot.slane %v546_v17, 4 }
 0x2ee   :  { %v548_v19 = vadd.f32 %v547_v18, %v546_v17  ;;  %v1028_v17 = vld [vmem:[%s1915_s7 + $0x70] sm:$0xff]  ;;  %v619_v18 = vld [vmem:[%s1915_s7] sm:$0xff] }
 0x2ef   :  { %668 = vmatpush.msrb.mxu2 %v1028_v17  ;;  %v871_v17 = vld [vmem:[%s1919_s11 + $0x58] sm:$0xff] }
 0x2f0   :  { %v549_v20 = vrot.slane %v548_v19, 2 }
 0x2f2   :  { %v550_v21 = vadd.f32 %v549_v20, %v548_v19  ;;  %v1044_v19 = vld [vmem:[%s1915_s7 + $0xe0] sm:$0xff] }
 0x2f3   :  { %730 = vmatpush.msra.mxu0 %v1044_v19  ;;  %v869_v19 = vld [vmem:[%s1919_s11 + $0x48] sm:$0xff] }
 0x2f4   :  { %v551_v22 = vrot.slane %v550_v21, 1 }
 0x2f6   :  { %v552_v23 = vadd.f32 %v551_v22, %v550_v21  ;;  %v1070_v22 = vld [vmem:[%s1917_s9 + $0xb8] sm:$0xff] }
 0x2f7   :  { %777 = vmatpush.msra.mxu2 %v1070_v22 }
 0x2f8   :  { %v553_v24 = vmul.f32 %v552_v23, %v1538_v35  ;;  %v630_v35 = vld [vmem:[%s1915_s7 + $0x58] sm:$0xff]  ;;  %v1069_v23 = vld [vmem:[%s1917_s9 + $0xb0] sm:$0xff] }
 0x2f9   :  { %680 = vmatpush.msrb.mxu3 %v630_v35  ;;  %778 = vmatpush.msra.mxu2 %v1069_v23  ;;  %v1065_v35 = vld [vmem:[%s1917_s9 + $0x90] sm:$0xff]  ;;  %v1104_v23 = vld [vmem:[%s1916_s8] ss:$0 sm:$0xff]  ;;  %s1177_s8 = smov [#allocation6]  }
 0x2fa   :  { %561 = vrot.lane.b32.xlu2 %v553_v24, %s1169_s20  ;;  %558 = vrot.lane.b32.xlu1 %v553_v24, %s1171_s1 }
 0x2fb   :  { %555 = vrot.lane.b32.xlu0 %v553_v24, %s1173_s21  ;;  %681 = vmatpush.msrb.mxu3 %v629_v39  ;;  %v1064_v39 = vld [vmem:[%s1917_s9 + $0x88] sm:$0xff] }
 0x2fc   :  { %779 = vmatpush.msra.mxu2 %v1068_v25 }
 0x2fd   :  { %682 = vmatpush.msrb.mxu3 %v628_v43 }
 0x2fe   :  { %780 = vmatpush.msra.mxu2 %v1067_v29 }
 0x2ff   :  { %683 = vmatpush.msrb.mxu3 %v627_v47 }
 0x301   :  { %684 = vmatpush.msrb.mxu3 %v626_v54  ;;  %v1081_v54 = vld [vmem:[%s1917_s9 + $0x100] sm:$0xff] }
 0x302   :  { %570 = vrot.lane.b32.xlu2 %v553_v24, %s1167_s18  ;;  %567 = vrot.lane.b32.xlu1 %v553_v24, %s1166_s17 }
 0x303   :  { %564 = vrot.lane.b32.xlu0 %v553_v24, %s1170_s4  ;;  %685 = vmatpush.msrb.mxu3 %v625_v61  ;;  %v753_v61 = vld [vmem:[%s1917_s9 + $0x48] sm:$0xff] }
 0x305   :  { %686 = vmatpush.msrb.mxu3 %v624_v1  ;;  %v751_v1 = vld [vmem:[%s1917_s9 + $0x38] sm:$0xff] }
 0x307   :  { %687 = vmatpush.msrb.mxu3 %v623_v4  ;;  %v1075_v4 = vld [vmem:[%s1917_s9 + $0xd0] sm:$0xff] }
 0x309   :  { %688 = vmatpush.msrb.mxu3 %v622_v7  ;;  %v748_v7 = vld [vmem:[%s1917_s9 + $0x20] sm:$0xff] }
 0x30b   :  { %689 = vmatpush.msrb.mxu3 %v621_v10  ;;  %v746_v10 = vld [vmem:[%s1917_s9 + $0x10] sm:$0xff] }
 0x30d   :  { %690 = vmatpush.msrb.mxu3 %v620_v13  ;;  %v875_v13 = vld [vmem:[%s1919_s11 + $0x78] sm:$0xff] }
 0x30e   :  { %880 = vmatpush.msra.mxu1 %v875_v13 }
 0x30f   :  { %691 = vmatpush.msrb.mxu3 %v619_v18  ;;  %v870_v18 = vld [vmem:[%s1919_s11 + $0x50] sm:$0xff] }
 0x311   :  { %835 = vmatpush.msra.mxu3 %v1084_v26 }
 0x313   :  { %836 = vmatpush.msra.mxu3 %v1083_v27 }
 0x315   :  { %837 = vmatpush.msra.mxu3 %v1082_v30 }
 0x317   :  { %838 = vmatpush.msra.mxu3 %v1081_v54 }
 0x354   :  { %v562_v32 = vpop.permute.xlu2 %561 }
 0x35c   :  { %v571_v57 = vpop.permute.xlu2 %570 }
 0x36c   :  { %v559_v28 = vpop.permute.xlu1 %558 }
 0x36d   :  { %v556_v33 = vpop.permute.xlu0 %555 }
 0x36e   :  { %v573_v37 = vsel %vm440_vm10, %v553_v24, %v556_v33  ;;  %v1102_v33 = vld [vmem:[%s1913_s5] ss:$0 sm:$0xff]  ;;  %s957_s5 = sshll.u32 %s1177_s8, 4  ;;  %s958_s5 = int_to_ptr.vmem [resolvable:$true] %s957_s5 }
 0x36f   :  { %v574_v41 = vsel %vm479_vm13, %v573_v37, %v559_v28 }
 0x370   :  { %v575_v49 = vsel %vm481_vm14, %v574_v41, %v562_v32  ;;  %v1066_v32 = vld [vmem:[%s1917_s9 + $0x98] sm:$0xff] }
 0x371   :  { %781 = vmatpush.msra.mxu2 %v1066_v32  ;;  %v867_v32 = vld [vmem:[%s1919_s11 + $0x38] sm:$0xff] }
 0x373   :  { %782 = vmatpush.msra.mxu2 %v1065_v35  ;;  %v864_v35 = vld [vmem:[%s1919_s11 + $0x20] sm:$0xff] }
 0x374   :  { %v568_v45 = vpop.permute.xlu1 %567 }
 0x375   :  { %v565_v50 = vpop.permute.xlu0 %564  ;;  %783 = vmatpush.msra.mxu2 %v1064_v39  ;;  %v860_v39 = vld [vmem:[%s1919_s11] sm:$0xff] }
 0x376   :  { %v576_v53 = vsel %vm483_vm15, %v575_v49, %v565_v50 }
 0x377   :  { %v577_v58 = vsel %vm485_vm0, %v576_v53, %v568_v45  ;;  %784 = vmatpush.msra.mxu2 %v1063_v42 }
 0x378   :  { %v578_v59 = vsel %vm487_vm1, %v577_v58, %v571_v57  ;;  %v755_v57 = vld [vmem:[%s1917_s9 + $0x58] sm:$0xff] }
 0x379   :  { %v579_v63 = vadd.f32 1e-05, %v578_v59  ;;  %v1080_v58 = vld [vmem:[%s1917_s9 + $0xf8] sm:$0xff]  ;;  %v754_v59 = vld [vmem:[%s1917_s9 + $0x50] sm:$0xff] }
 0x37a   :  { %839 = vmatpush.msra.mxu3 %v1080_v58 }
 0x37b   :  { %1109 = vrsqrt.f32 %v579_v63  ;;  %vm586_vm7 = vweird.f32 %v579_v63 }
 0x37c   :  { %840 = vmatpush.msra.mxu3 %v1079_v60 }
 0x37e   :  { %841 = vmatpush.msra.mxu3 %v1078_v62 }
 0x380   :  { %842 = vmatpush.msra.mxu3 %v1077_v0 }
 0x381   :  { %v1110_v14 = vpop.eup %1109 }
 0x382   :  { %v581_v16 = vmul.f32 %v1110_v14, %v579_v63  ;;  %vm587_vm2 = vweird.f32 %v1110_v14  ;;  %v752_v63 = vld [vmem:[%s1917_s9 + $0x40] sm:$0xff]  ;;  %843 = vmatpush.msra.mxu3 %v1076_v2 }
 0x383   :  { %vm588_vm8 = vmor %vm586_vm7, %vm587_vm2 }
 0x384   :  { %v582_v20 = vmul.f32 %v1110_v14, %v581_v16  ;;  %844 = vmatpush.msra.mxu3 %v1075_v4  ;;  %v872_v16 = vld [vmem:[%s1919_s11 + $0x60] sm:$0xff] }
 0x386   :  { %v583_v21 = vmul.f32 0.5, %v582_v20  ;;  %845 = vmatpush.msra.mxu3 %v1074_v6 }
 0x388   :  { %v584_v24 = vsub.f32 1.5, %v583_v21  ;;  %846 = vmatpush.msra.mxu3 %v1073_v8 }
 0x38a   :  { %v585_v28 = vmul.f32 %v1110_v14, %v584_v24 }
 0x38c   :  { %v589_v31 = vsel %vm588_vm8, %v1110_v14, %v585_v28  ;;  %v874_v14 = vld [vmem:[%s1919_s11 + $0x70] sm:$0xff] }
 0x38d   :  { %v590_v34 = vperm.slane %v589_v31, 0  ;;  %881 = vmatpush.msra.mxu1 %v874_v14  ;;  %v868_v31 = vld [vmem:[%s1919_s11 + $0x40] sm:$0xff] }
 0x38f   :  { %v591_v37 = vmul.f32 %v590_v34, %v1554_v51  ;;  %v592_v38 = vmul.f32 %v590_v34, %v1557_v52  ;;  %v1062_v51 = vld [vmem:[%s1917_s9 + $0x78] sm:$0xff]  ;;  %882 = vmatpush.msra.mxu1 %v873_v15  ;;  %v865_v34 = vld [vmem:[%s1919_s11 + $0x28] sm:$0xff] }
 0x390   :  { %785 = vmatpush.msra.mxu2 %v1062_v51 }
 0x391   :  { %v597_v40 = vmul.f32 %v1102_v33, %v591_v37  ;;  %v598_v41 = vmul.f32 %v1102_v33, %v592_v38  ;;  %883 = vmatpush.msra.mxu1 %v872_v16  ;;  %v866_v33 = vld [vmem:[%s1919_s11 + $0x30] sm:$0xff]  ;;  %v861_v38 = vld [vmem:[%s1919_s11 + $0x8] sm:$0xff] }
 0x392   :  { %786 = vmatpush.msra.mxu2 %v1061_v46  ;;  %v862_v37 = vld [vmem:[%s1919_s11 + $0x10] sm:$0xff] }
 0x393   :  { %v603_v43 = vadd.f32 %v1103_v36, %v597_v40  ;;  %v604_v44 = vadd.f32 %v1103_v36, %v598_v41  ;;  %884 = vmatpush.msra.mxu1 %v871_v17  ;;  %v863_v36 = vld [vmem:[%s1919_s11 + $0x18] sm:$0xff]  ;;  %v902_v40 = vld [vmem:[%s1921_s13] sm:$0x3] }
 0x394   :  { %787 = vmatpush.msra.mxu2 %v1060_v55  ;;  %904 = vrot.lane.b32.xlu2 %v902_v40, %s1174_s22 }
 0x395   :  { %vm605_vm9 = vcmp.gt.f32.partialorder %v603_v43, 0.0  ;;  %v607_v52 = vmul.f32 0.01, %v603_v43  ;;  %v608_v45 = vmul.f32 0.01, %v604_v44  ;;  %vm606_vm10 = vcmp.gt.f32.partialorder %v604_v44, 0.0  ;;  %885 = vmatpush.msra.mxu1 %v870_v18 }
 0x396   :  { %788 = vmatpush.msra.mxu2 %v1059_v56 }
 0x397   :  { %v609_v47 = vsel %vm605_vm9, %v603_v43, %v607_v52  ;;  %v610_v48 = vsel %vm606_vm10, %v604_v44, %v608_v45  ;;  %886 = vmatpush.msra.mxu1 %v869_v19  ;;  %v1105_v44 = vld [vmem:[%s1918_s10] ss:$0 sm:$0xff]  ;;  %s1175_s10 = smov 120  }
 0x398   :  { %611 = vst.msk [vmem:[#allocation3] sm:$0x3] %vm239_vm3, %v609_v47 }
 0x399   :  { %612 = vst.msk [vmem:[#allocation3 + $0x6] sm:$0xc] %vm241_vm4, %v609_v47  ;;  %887 = vmatpush.msra.mxu1 %v868_v31 }
 0x39a   :  { %613 = vst.msk [vmem:[#allocation3 - $0x2] sm:$0x30] %vm243_vm5, %v609_v47 }
 0x39b   :  { %614 = vst.msk [vmem:[#allocation3 + $0x4] sm:$0xc0] %vm245_vm6, %v609_v47  ;;  %888 = vmatpush.msra.mxu1 %v867_v32  ;;  %vm931_vm6 = vcmask 1041408  }
 0x39c   :  { %615 = vst.msk [vmem:[#allocation3 + $0x4] sm:$0x3] %vm239_vm3, %v610_v48 }
 0x39d   :  { %616 = vst.msk [vmem:[#allocation3 + $0xa] sm:$0xc] %vm241_vm4, %v610_v48  ;;  %889 = vmatpush.msra.mxu1 %v866_v33 }
 0x39e   :  { %617 = vst.msk [vmem:[#allocation3 + $0x2] sm:$0x30] %vm243_vm5, %v610_v48  ;;  %v1106_v48 = vld [vmem:[%s1920_s12] ss:$0 sm:$0xff]  ;;  %vm913_vm5 = vcmask 58368   ;;  %s1176_s12 = smov [#allocation4]  }
 0x39f   :  { %890 = vmatpush.msra.mxu1 %v865_v34  ;;  %s946_s13 = sshll.u32 %s1176_s12, 4  ;;  %s947_s13 = int_to_ptr.vmem [resolvable:$true] %s946_s13 }
 0x3a1   :  { %891 = vmatpush.msra.mxu1 %v864_v35 }
 0x3a3   :  { %v618_v49 = vld [vmem:[#allocation3] sm:$0x3f]  ;;  %892 = vmatpush.msra.mxu1 %v863_v36 }
 0x3a4   :  { %v633_v50 = vld [vmem:[#allocation3 + $0x8] sm:$0x3f]  ;;  %1043 = vmatmul.msk.f32.vlgmr.msrb.gmra.mxu3 %vm649_vm11, %v618_v49 }
 0x3a5   :  { %1042 = vmatmul.msk.f32.vlgmr.msrb.gmra.mxu2 %vm649_vm11, %v633_v50  ;;  %v696_v53 = vld [vmem:[#allocation3 + $0x2] sm:$0x3f]  ;;  %893 = vmatpush.msra.mxu1 %v862_v37 }
 0x3a6   :  { %1058 = vmatmul.msk.f32.vlgmr.msra.gmra.mxu0 %vm649_vm11, %v696_v53  ;;  %799 = vmatpush.msrb.mxu2 %v755_v57 }
 0x3a7   :  { %894 = vmatpush.msra.mxu1 %v861_v38 }
 0x3a8   :  { %800 = vmatpush.msrb.mxu2 %v754_v59 }
 0x3a9   :  { %895 = vmatpush.msra.mxu1 %v860_v39 }
 0x3aa   :  { %801 = vmatpush.msrb.mxu2 %v753_v61 }
 0x3ac   :  { %802 = vmatpush.msrb.mxu2 %v752_v63 }
 0x3ae   :  { %803 = vmatpush.msrb.mxu2 %v751_v1 }
 0x3b0   :  { %804 = vmatpush.msrb.mxu2 %v750_v3 }
 0x3b2   :  { %805 = vmatpush.msrb.mxu2 %v749_v5 }
 0x3b4   :  { %806 = vmatpush.msrb.mxu2 %v748_v7 }
 0x3b6   :  { %807 = vmatpush.msrb.mxu2 %v747_v9 }
 0x3b8   :  { %808 = vmatpush.msrb.mxu2 %v746_v10 }
 0x3ba   :  { %809 = vmatpush.msrb.mxu2 %v745_v11 }
 0x3bc   :  { %810 = vmatpush.msrb.mxu2 %v744_v12 }
 0x3ee   :  { %v905_v61 = vpop.permute.xlu2 %904 }
 0x423   :  { %v732_v24 = vpop.f32.mrf.mxu0 }
 0x427   :  { %v693_v20 = vpop.f32.mrf.mxu3 }
 0x428   :  { %v670_v21 = vpop.f32.mrf.mxu2 }
 0x429   :  { %v694_v22 = vadd.f32 %v693_v20, %v670_v21 }
 0x42b   :  { %v735_v25 = vadd.f32 %v732_v24, %v694_v22 }
 0x42d   :  { %v740_v26 = vadd.f32 %v1104_v23, %v735_v25 }
 0x42f   :  { %vm741_vm3 = vcmp.gt.f32.partialorder %v740_v26, 0.0  ;;  %v742_v27 = vmul.f32 0.01, %v740_v26 }
 0x431   :  { %v743_v28 = vsel %vm741_vm3, %v740_v26, %v742_v27 }
 0x432   :  { %v770_v29 = vrot.slane %v743_v28, 2  ;;  %v828_v30 = vrot.slane %v743_v28, 4 }
 0x434   :  { %1071 = vmatmul.msk.f32.vlgmr.msra.gmra.mxu2 %vm487_vm1, %v770_v29  ;;  %1085 = vmatmul.msk.f32.vlgmr.msra.gmra.mxu3 %vm487_vm1, %v828_v30 }
 0x43c   :  { %1072 = vmatmul.msk.f32.vlgmr.msrb.gmra.mxu2 %vm487_vm1, %v743_v28 }
 0x4b7   :  { %v790_v41 = vpop.f32.mrf.mxu2  ;;  %v848_v51 = vpop.f32.mrf.mxu3 }
 0x4bf   :  { %v812_v42 = vpop.f32.mrf.mxu2 }
 0x4c0   :  { %v813_v43 = vadd.f32 %v812_v42, %v790_v41 }
 0x4c2   :  { %v851_v52 = vadd.f32 %v848_v51, %v813_v43 }
 0x4c4   :  { %v856_v45 = vadd.f32 %v1105_v44, %v851_v52 }
 0x4c6   :  { %vm857_vm4 = vcmp.gt.f32.partialorder %v856_v45, 0.0  ;;  %v858_v46 = vmul.f32 0.01, %v856_v45 }
 0x4c8   :  { %v859_v47 = vsel %vm857_vm4, %v856_v45, %v858_v46 }
 0x4c9   :  { %896 = vmatmul.f32.vlgmr.msra.gmra.mxu1 %v859_v47 }
 0x546   :  { %v897_v49 = vpop.f32.mrf.mxu1 }
 0x547   :  { %v898_v50 = vadd.f32 %v1106_v48, %v897_v49 }
 0x549   :  { %v916_v53 = vmul.f32 %v898_v50, %v898_v50  ;;  %v900_v55 = vmul.f32 1.442695, %v898_v50 }
 0x54b   :  { %918 = vrot.lane.b32.xlu0 %v916_v53, %s1174_s22  ;;  %1111 = vpow2.f32 %v900_v55 }
 0x551   :  { %v1112_v54 = vpop.eup %1111 }
 0x552   :  { %v915_v56 = vmul.f32 %v1112_v54, %v1112_v54  ;;  %v907_v62 = vmul.f32 %v1112_v54, %v905_v61 }
 0x5bd   :  { %v919_v57 = vpop.permute.xlu0 %918 }
 0x5be   :  { %v921_v58 = vadd.f32 %v919_v57, %v915_v56 }
 0x5c0   :  { %v922_v59 = vsub.f32 %v921_v58, %v898_v50 }
 0x5c2   :  { %v1086_v60 = vadd.f32 -0.5, %v922_v59 }
 0x5c4   :  { %925 = vrot.lane.b32.xlu1 %v1086_v60, %s1175_s10 }
 0x5cc   :  { %909 = vrot.lane.b32.xlu1 %v907_v62, %s1175_s10 }
 0x636   :  { %v926_v63 = vpop.permute.xlu1 %925 }
 0x637   :  { %v928_v0 = vsel %vm913_vm5, %v926_v63, 0.0 }
 0x638   :  { %929 = vadd.xlane.f32.xlu0 %v928_v0 }
 0x63e   :  { %v910_v1 = vpop.permute.xlu1 %909 }
 0x63f   :  { %v912_v2 = vadd.f32 %v910_v1, %v898_v50 }
 0x641   :  { %914 = vst.msk [vmem:[#allocation4] sm:$0x3] %vm913_vm5, %v912_v2 }
 0x642   :  { %951 = dma.vmem_to_hbm [thread:$0]  %s947_s13, 32, %s949_s27, [#allocation5]  }
 0x6ab   :  { %v930_v3 = vpop.xlane.xlu0 %929 }
 0x6ac   :  { %v932_v4 = vsel %vm931_vm6, %v930_v3, 0.0 }
 0x6ad   :  { %v933_v5 = vrot.slane %v932_v4, 4 }
 0x6af   :  { %v934_v6 = vadd.f32 %v933_v5, %v932_v4 }
 0x6b1   :  { %v935_v7 = vrot.slane %v934_v6, 2 }
 0x6b3   :  { %v936_v8 = vadd.f32 %v935_v7, %v934_v6 }
 0x6b5   :  { %v937_v9 = vrot.slane %v936_v8, 1 }
 0x6b7   :  { %v938_v10 = vadd.f32 %v937_v9, %v936_v8 }
 0x6b9   :  { %940 = vst.msk [vmem:[#allocation6] sm:$0x1] %vm939_vm12, %v938_v10 }
 0x6ba   :  { %962 = dma.vmem_to_hbm [thread:$0]  %s958_s5, 16, %s960_s29, [#allocation7]  }
 0x6bb   :  { %1161 = dma.done.wait [#allocation5], 32  }
 0x6bc   :  { %1162 = vsyncadd [#allocation5], 4294967264 }
 0x6bd   :  { %1163 = dma.done.wait [#allocation7], 16  }
 0x6be   :  { %1164 = vsyncadd [#allocation7], 4294967280 }
 0x6bf   :  { %971 = vsyncpa [#allocation5], 1 }
 0x6c0   :  { %972 = vsyncpa [#allocation7], 1 }

</bundles_post_ra>
